<compile_context>
chip_gen: v7x
topology: tpu7x:2x2x1
jax: 0.10.0
libtpu: 0.0.40
codegen_flags: <defaults>
</compile_context>

<pallas_src>
import functools

import jax
import jax.numpy as jnp
from jax.experimental import pallas as pl
from jax.experimental.pallas import tpu as pltpu

LAYER_DIMS = [784, 520, 320, 240, 120, 10]


def _round_up(n, m):
    return (n + m - 1) // m * m


# Only output feature dims are lane-padded; the 784 input dim stays exact.
PAD_DIMS = [LAYER_DIMS[0]] + [_round_up(d, 128) for d in LAYER_DIMS[1:]]
# -> [784, 640, 384, 256, 128, 128]

# Static offsets of each layer's bias inside the fused (1, 1536) bias slab.
_BIAS_OFFS = [0]
for _d in PAD_DIMS[1:]:
    _BIAS_OFFS.append(_BIAS_OFFS[-1] + _d)      # [0, 640, 1024, 1280, 1408, 1536]
_BIAS_TOTAL = _BIAS_OFFS[-1]


def _mlp_kernel(x_ref, w1_ref, w2_ref, w3_ref, w4_ref, w5_ref, b_ref, o_ref):
    """Fused 5-layer MLP on one (TB, 784) batch tile.

    Weights are bf16 (output dims lane-padded); dots accumulate in f32 on the
    MXU; bias add + ReLU run in f32, then re-cast to bf16 for the next layer.
    """
    h = x_ref[...].astype(jnp.bfloat16)                 # (TB, 784) bf16
    w_refs = (w1_ref, w2_ref, w3_ref, w4_ref, w5_ref)
    for idx, w_ref in enumerate(w_refs):
        lo, hi = _BIAS_OFFS[idx], _BIAS_OFFS[idx + 1]   # static, 128-aligned
        acc = jnp.dot(h, w_ref[...], preferred_element_type=jnp.float32)
        acc = acc + b_ref[:, lo:hi]                     # (1, out) f32 bias
        if idx < len(w_refs) - 1:
            h = jnp.maximum(acc, 0.0).astype(jnp.bfloat16)
        else:
            o_ref[...] = acc                            # lane-dense 128-wide f32 store


def init_params(key):
    """nn.Linear-style init at the TRUE (unpadded) dims, f32, W as (in, out)."""
    params = []
    for in_f, out_f in zip(LAYER_DIMS[:-1], LAYER_DIMS[1:]):
        key, kw, kb = jax.random.split(key, 3)
        bound = 1.0 / jnp.sqrt(jnp.float32(in_f))
        w = jax.random.uniform(kw, (in_f, out_f), jnp.float32, -bound, bound)
        b = jax.random.uniform(kb, (out_f,), jnp.float32, -bound, bound)
        params.append((w, b))
    return params


def pack_params(params):
    """One-time prep (outside the jit'd forward): zero-pad output dims to lane
    multiples, cast weights to bf16, fuse all biases into one f32 slab."""
    ws = []
    bias_slab = jnp.zeros((1, _BIAS_TOTAL), jnp.float32)
    for i, (w, b) in enumerate(params):
        in_p, out_p = PAD_DIMS[i], PAD_DIMS[i + 1]
        in_f, out_f = w.shape
        w_p = jnp.zeros((in_p, out_p), jnp.bfloat16)
        w_p = w_p.at[:in_f, :out_f].set(w.astype(jnp.bfloat16))
        ws.append(w_p)
        # Padded bias lanes stay zero -> padded activation lanes stay zero.
        bias_slab = bias_slab.at[0, _BIAS_OFFS[i]:_BIAS_OFFS[i] + out_f].set(b)
    return tuple(ws), bias_slab


@functools.partial(jax.jit, static_argnames=("tile_b",))
def net_forward(x, packed, *, tile_b=512):
    """Equivalent of Net.forward: x.view(-1, 784) -> 5 linear layers (logits)."""
    ws, bias_slab = packed
    x2d = x.reshape(-1, LAYER_DIMS[0]).astype(jnp.float32)
    batch = x2d.shape[0]

    # Keep the working batch a multiple of 8 (sublane); only pads for odd
    # batch sizes (never for the usual power-of-two batches).
    pad_rows = (-batch) % 8
    if pad_rows:
        x2d = jnp.concatenate(
            [x2d, jnp.zeros((pad_rows, LAYER_DIMS[0]), x2d.dtype)], axis=0)
    b_work = batch + pad_rows

    # --- batch-tile selection ------------------------------------------------
    tile_b = _round_up(tile_b, 16)
    if b_work <= 2 * tile_b:
        # Aim for >= 2 grid steps so v7x megacore keeps both TensorCores busy.
        tb = max(16, _round_up(pl.cdiv(b_work, 2), 16))
    else:
        tb = tile_b
    tb = min(tb, b_work)                 # never exceed the working batch
    grid = pl.cdiv(b_work, tb)

    # --- specs ----------------------------------------------------------------
    in_specs = [pl.BlockSpec((tb, LAYER_DIMS[0]), lambda i: (i, 0))]
    for w in ws:
        # Grid-invariant weights: constant index_map -> VMEM-resident, no
        # re-DMA across grid steps.
        in_specs.append(pl.BlockSpec(w.shape, lambda i: (0, 0)))
    in_specs.append(pl.BlockSpec(bias_slab.shape, lambda i: (0, 0)))

    flops = 2 * b_work * sum(i * o for i, o in zip(PAD_DIMS[:-1], PAD_DIMS[1:]))
    bytes_accessed = (b_work * LAYER_DIMS[0] * 4            # x (f32)
                      + sum(int(w.size) * 2 for w in ws)    # bf16 weights
                      + _BIAS_TOTAL * 4                     # bias slab
                      + b_work * PAD_DIMS[-1] * 4)          # logits (f32)

    out_p = pl.pallas_call(
        _mlp_kernel,
        out_shape=jax.ShapeDtypeStruct((b_work, PAD_DIMS[-1]), jnp.float32),
        grid=(grid,),
        in_specs=in_specs,
        out_specs=pl.BlockSpec((tb, PAD_DIMS[-1]), lambda i: (i, 0)),
        compiler_params=pltpu.CompilerParams(
            dimension_semantics=("parallel",),   # megacore batch sharding (v7x)
            # tile_b >= 1024 overflows v5e's 16 MiB scoped-VMEM default.
            vmem_limit_bytes=(48 * 1024 * 1024) if tb >= 1024 else None,
        ),
        cost_estimate=pl.CostEstimate(
            flops=int(flops), transcendentals=0,
            bytes_accessed=int(bytes_accessed)),
    )(x2d, *ws, bias_slab)

    return out_p[:batch, :LAYER_DIMS[-1]]


def net_forward_ref_bf16(x, params):
    """Pure-JAX reference with the SAME bf16-weight / f32-accum math."""
    h = x.reshape(-1, 784).astype(jnp.bfloat16)
    for i, (w, b) in enumerate(params):
        acc = jnp.dot(h, w.astype(jnp.bfloat16),
                      preferred_element_type=jnp.float32) + b
        if i < len(params) - 1:
            h = jnp.maximum(acc, 0.0).astype(jnp.bfloat16)
        else:
            h = acc
    return h


def net_forward_ref_f32(x, params):
    """Full-precision reference (sanity only; bf16 weights add small error)."""
    h = x.reshape(-1, 784).astype(jnp.float32)
    for i, (w, b) in enumerate(params):
        h = h @ w + b
        if i < len(params) - 1:
            h = jnp.maximum(h, 0.0)
    return h


if __name__ == "__main__":
    key = jax.random.PRNGKey(0)
    key_p, key_x = jax.random.split(key)

    params = init_params(key_p)
    packed = pack_params(params)    # one-time pad/cast/fuse, outside the jit

    # Small MNIST-like batch: NCHW (B=8, C=1, H=28, W=28) -> flattened to 784.
    x = jax.random.normal(key_x, (8, 1, 28, 28), jnp.float32)

    out = net_forward(x, packed)
    out = jax.block_until_ready(out)
    assert out.shape == (8, 10), out.shape

    # Tight check vs a reference using identical bf16-weight / f32-accum math.
    ref_bf16 = net_forward_ref_bf16(x, params)
    assert jnp.allclose(out, ref_bf16, atol=1e-2, rtol=1e-2), (
        "mismatch vs bf16 reference")

    # Loose sanity check vs the full-f32 reference (bf16 quantization error).
    ref_f32 = net_forward_ref_f32(x, params)
    max_err = float(jnp.max(jnp.abs(out - ref_f32)))
    assert max_err < 0.5, f"bf16 error vs f32 reference too large: {max_err}"

    print("KERNEL_OK")
</pallas_src>

<mosaic_0001>
module attributes {stable_mosaic.version = 11 : i64} {
  func.func @_mlp_kernel(%arg0: i32, %arg1: memref<8x784xf32, #tpu.memory_space<vmem>>, %arg2: memref<784x640xbf16, #tpu.memory_space<vmem>>, %arg3: memref<640x384xbf16, #tpu.memory_space<vmem>>, %arg4: memref<384x256xbf16, #tpu.memory_space<vmem>>, %arg5: memref<256x128xbf16, #tpu.memory_space<vmem>>, %arg6: memref<128x128xbf16, #tpu.memory_space<vmem>>, %arg7: memref<1x1536xf32, #tpu.memory_space<vmem>>, %arg8: memref<8x128xf32, #tpu.memory_space<vmem>>) attributes {dimension_semantics = [#tpu.dimension_semantics<parallel>], iteration_bounds = array<i64: 1>, scalar_prefetch = 0 : i64, scratch_operands = 0 : i64, tpu.core_type = #tpu.core_type<tc>, window_params = [{transform_indices = @transform_0, window_bounds = array<i64: 8, 784>}, {pipeline_mode = #tpu.pipeline_mode<synchronous>, transform_indices = @transform_1, window_bounds = array<i64: 784, 640>}, {pipeline_mode = #tpu.pipeline_mode<synchronous>, transform_indices = @transform_2, window_bounds = array<i64: 640, 384>}, {pipeline_mode = #tpu.pipeline_mode<synchronous>, transform_indices = @transform_3, window_bounds = array<i64: 384, 256>}, {pipeline_mode = #tpu.pipeline_mode<synchronous>, transform_indices = @transform_4, window_bounds = array<i64: 256, 128>}, {pipeline_mode = #tpu.pipeline_mode<synchronous>, transform_indices = @transform_5, window_bounds = array<i64: 128, 128>}, {pipeline_mode = #tpu.pipeline_mode<synchronous>, transform_indices = @transform_6, window_bounds = array<i64: 1, 1536>}, {transform_indices = @transform_7, window_bounds = array<i64: 8, 128>}]} {
    %c0 = arith.constant 0 : index
    %c0_0 = arith.constant 0 : index
    %0 = vector.load %arg1[%c0, %c0_0] : memref<8x784xf32, #tpu.memory_space<vmem>>, vector<8x784xf32>
    %1 = arith.truncf %0 : vector<8x784xf32> to vector<8x784xbf16>
    %c0_1 = arith.constant 0 : index
    %c0_2 = arith.constant 0 : index
    %2 = vector.load %arg2[%c0_1, %c0_2] : memref<784x640xbf16, #tpu.memory_space<vmem>>, vector<784x640xbf16>
    %cst = arith.constant dense<0.000000e+00> : vector<8x640xf32>
    %3 = tpu.matmul %1, %2, %cst {dimension_numbers = #tpu.dot_dimension_numbers<[1], [0], [0], [1], [0, 0, 1, 1], [], []>} : vector<8x784xbf16>, vector<784x640xbf16>, vector<8x640xf32> -> vector<8x640xf32>
    %c0_3 = arith.constant 0 : index
    %c0_4 = arith.constant 0 : index
    %4 = vector.load %arg7[%c0_3, %c0_4] : memref<1x1536xf32, #tpu.memory_space<vmem>>, vector<1x640xf32>
    %5 = vector.broadcast %4 : vector<1x640xf32> to vector<8x640xf32>
    %6 = arith.addf %3, %5 : vector<8x640xf32>
    %cst_5 = arith.constant 0.000000e+00 : f32
    %7 = vector.broadcast %cst_5 : f32 to vector<8x640xf32>
    %8 = arith.maximumf %6, %7 : vector<8x640xf32>
    %9 = arith.truncf %8 : vector<8x640xf32> to vector<8x640xbf16>
    %c0_6 = arith.constant 0 : index
    %c0_7 = arith.constant 0 : index
    %10 = vector.load %arg3[%c0_6, %c0_7] : memref<640x384xbf16, #tpu.memory_space<vmem>>, vector<640x384xbf16>
    %cst_8 = arith.constant dense<0.000000e+00> : vector<8x384xf32>
    %11 = tpu.matmul %9, %10, %cst_8 {dimension_numbers = #tpu.dot_dimension_numbers<[1], [0], [0], [1], [0, 0, 1, 1], [], []>} : vector<8x640xbf16>, vector<640x384xbf16>, vector<8x384xf32> -> vector<8x384xf32>
    %c0_9 = arith.constant 0 : index
    %c640 = arith.constant 640 : index
    %12 = vector.load %arg7[%c0_9, %c640] : memref<1x1536xf32, #tpu.memory_space<vmem>>, vector<1x384xf32>
    %13 = vector.broadcast %12 : vector<1x384xf32> to vector<8x384xf32>
    %14 = arith.addf %11, %13 : vector<8x384xf32>
    %cst_10 = arith.constant 0.000000e+00 : f32
    %15 = vector.broadcast %cst_10 : f32 to vector<8x384xf32>
    %16 = arith.maximumf %14, %15 : vector<8x384xf32>
    %17 = arith.truncf %16 : vector<8x384xf32> to vector<8x384xbf16>
    %c0_11 = arith.constant 0 : index
    %c0_12 = arith.constant 0 : index
    %18 = vector.load %arg4[%c0_11, %c0_12] : memref<384x256xbf16, #tpu.memory_space<vmem>>, vector<384x256xbf16>
    %cst_13 = arith.constant dense<0.000000e+00> : vector<8x256xf32>
    %19 = tpu.matmul %17, %18, %cst_13 {dimension_numbers = #tpu.dot_dimension_numbers<[1], [0], [0], [1], [0, 0, 1, 1], [], []>} : vector<8x384xbf16>, vector<384x256xbf16>, vector<8x256xf32> -> vector<8x256xf32>
    %c0_14 = arith.constant 0 : index
    %c1024 = arith.constant 1024 : index
    %20 = vector.load %arg7[%c0_14, %c1024] : memref<1x1536xf32, #tpu.memory_space<vmem>>, vector<1x256xf32>
    %21 = vector.broadcast %20 : vector<1x256xf32> to vector<8x256xf32>
    %22 = arith.addf %19, %21 : vector<8x256xf32>
    %cst_15 = arith.constant 0.000000e+00 : f32
    %23 = vector.broadcast %cst_15 : f32 to vector<8x256xf32>
    %24 = arith.maximumf %22, %23 : vector<8x256xf32>
    %25 = arith.truncf %24 : vector<8x256xf32> to vector<8x256xbf16>
    %c0_16 = arith.constant 0 : index
    %c0_17 = arith.constant 0 : index
    %26 = vector.load %arg5[%c0_16, %c0_17] : memref<256x128xbf16, #tpu.memory_space<vmem>>, vector<256x128xbf16>
    %cst_18 = arith.constant dense<0.000000e+00> : vector<8x128xf32>
    %27 = tpu.matmul %25, %26, %cst_18 {dimension_numbers = #tpu.dot_dimension_numbers<[1], [0], [0], [1], [0, 0, 1, 1], [], []>} : vector<8x256xbf16>, vector<256x128xbf16>, vector<8x128xf32> -> vector<8x128xf32>
    %c0_19 = arith.constant 0 : index
    %c1280 = arith.constant 1280 : index
    %28 = vector.load %arg7[%c0_19, %c1280] : memref<1x1536xf32, #tpu.memory_space<vmem>>, vector<1x128xf32>
    %29 = vector.broadcast %28 : vector<1x128xf32> to vector<8x128xf32>
    %30 = arith.addf %27, %29 : vector<8x128xf32>
    %cst_20 = arith.constant 0.000000e+00 : f32
    %31 = vector.broadcast %cst_20 : f32 to vector<8x128xf32>
    %32 = arith.maximumf %30, %31 : vector<8x128xf32>
    %33 = arith.truncf %32 : vector<8x128xf32> to vector<8x128xbf16>
    %c0_21 = arith.constant 0 : index
    %c0_22 = arith.constant 0 : index
    %34 = vector.load %arg6[%c0_21, %c0_22] : memref<128x128xbf16, #tpu.memory_space<vmem>>, vector<128x128xbf16>
    %cst_23 = arith.constant dense<0.000000e+00> : vector<8x128xf32>
    %35 = tpu.matmul %33, %34, %cst_23 {dimension_numbers = #tpu.dot_dimension_numbers<[1], [0], [0], [1], [0, 0, 1, 1], [], []>} : vector<8x128xbf16>, vector<128x128xbf16>, vector<8x128xf32> -> vector<8x128xf32>
    %c0_24 = arith.constant 0 : index
    %c1408 = arith.constant 1408 : index
    %36 = vector.load %arg7[%c0_24, %c1408] : memref<1x1536xf32, #tpu.memory_space<vmem>>, vector<1x128xf32>
    %37 = vector.broadcast %36 : vector<1x128xf32> to vector<8x128xf32>
    %38 = arith.addf %35, %37 : vector<8x128xf32>
    %c0_25 = arith.constant 0 : index
    %c0_26 = arith.constant 0 : index
    %39 = vector.load %arg8[%c0_25, %c0_26] : memref<8x128xf32, #tpu.memory_space<vmem>>, vector<8x128xf32>
    tpu.vector_store %arg8[%c0_25, %c0_26], %38 {strides = array<i32>} : memref<8x128xf32, #tpu.memory_space<vmem>>, vector<8x128xf32>,
    return
  }
  func.func @transform_0(%arg0: i32) -> (i32, i32) {
    %c0_i32 = arith.constant 0 : i32
    %c0_i32_0 = arith.constant 0 : i32
    return %arg0, %c0_i32 : i32, i32
  }
  func.func @transform_1(%arg0: i32) -> (i32, i32) {
    %c0_i32 = arith.constant 0 : i32
    %c0_i32_0 = arith.constant 0 : i32
    %c0_i32_1 = arith.constant 0 : i32
    return %c0_i32, %c0_i32_0 : i32, i32
  }
  func.func @transform_2(%arg0: i32) -> (i32, i32) {
    %c0_i32 = arith.constant 0 : i32
    %c0_i32_0 = arith.constant 0 : i32
    %c0_i32_1 = arith.constant 0 : i32
    return %c0_i32, %c0_i32_0 : i32, i32
  }
  func.func @transform_3(%arg0: i32) -> (i32, i32) {
    %c0_i32 = arith.constant 0 : i32
    %c0_i32_0 = arith.constant 0 : i32
    %c0_i32_1 = arith.constant 0 : i32
    return %c0_i32, %c0_i32_0 : i32, i32
  }
  func.func @transform_4(%arg0: i32) -> (i32, i32) {
    %c0_i32 = arith.constant 0 : i32
    %c0_i32_0 = arith.constant 0 : i32
    %c0_i32_1 = arith.constant 0 : i32
    return %c0_i32, %c0_i32_0 : i32, i32
  }
  func.func @transform_5(%arg0: i32) -> (i32, i32) {
    %c0_i32 = arith.constant 0 : i32
    %c0_i32_0 = arith.constant 0 : i32
    %c0_i32_1 = arith.constant 0 : i32
    return %c0_i32, %c0_i32_0 : i32, i32
  }
  func.func @transform_6(%arg0: i32) -> (i32, i32) {
    %c0_i32 = arith.constant 0 : i32
    %c0_i32_0 = arith.constant 0 : i32
    %c0_i32_1 = arith.constant 0 : i32
    return %c0_i32, %c0_i32_0 : i32, i32
  }
  func.func @transform_7(%arg0: i32) -> (i32, i32) {
    %c0_i32 = arith.constant 0 : i32
    %c0_i32_0 = arith.constant 0 : i32
    return %arg0, %c0_i32 : i32, i32
  }
}

</mosaic_0001>

<bundles_post_ra>
// kernel: net_forward.1
= control target key start
LH: loop header
LB: loop body
LE: loop exit
PB: predicated region body
PF: predicated region fallthrough
CT: control target
= control target key end

     0   :  { %12 = vsyncpa [#allocation3], 0  ;;  %s5730_s0 = inlined_call_operand.vmem [shape: f32[8,784], index: 0, kind: input, shape index: {}]   ;;  %s5731_s1 = inlined_call_operand.hbm [shape: bf16[784,640], index: 1, kind: input, shape index: {}]   ;;  %s5732_s2 = inlined_call_operand.hbm [shape: bf16[640,384], index: 2, kind: input, shape index: {}]   ;;  %s5733_s3 = inlined_call_operand.vmem [shape: bf16[384,256], index: 3, kind: input, shape index: {}]   ;;  %s5734_s4 = inlined_call_operand.vmem [shape: bf16[256,128], index: 4, kind: input, shape index: {}]   ;;  %s5735_s5 = inlined_call_operand.vmem [shape: bf16[128,128], index: 5, kind: input, shape index: {}]   ;;  %s5736_s6 = inlined_call_operand.vmem [shape: f32[1,1536], index: 6, kind: input, shape index: {}]   ;;  %s5737_s7 = inlined_call_operand.hbm [shape: f32[8,128], index: 7, kind: output, shape index: {}]  }
   0x1   :  { %13 = vsyncpa [#allocation6], 0 }
   0x2   :  { %14 = vsyncpa [#allocation4], 0  ;;  %s5289_s24 = smov [#allocation2]   ;;  %s5217_s28 = scalar_lea.hbm %s5731_s1, 31360 }
   0x3   :  { %s22_s25 = sshll.u32 %s5289_s24, 4  ;;  %p5218_p0 = scmp.ne.s32.totalorder %s5731_s1, %s5217_s28  ;;  %s23_s25 = int_to_ptr.vmem [resolvable:$true] %s22_s25 }
   0x4   :  { %p5221_p1 = scmp.lt.u32.totalorder %s5217_s28, %s5731_s1 }
   0x6   :  { %p5223_p2 = pnand %p5221_p1, %p5218_p0 }
   0x8   :  { %5226 = shalt.err (!%p5223_p2)
}
   0x9   :  { %s5227_s10 = scalar_lea.vmem %s23_s25, 31360  ;;  %p5232_p4 = scmp.lt.s32.totalorder %s23_s25, %s23_s25 }
   0xa   :  { %p5228_p3 = scmp.ne.s32.totalorder %s23_s25, %s5227_s10  ;;  %p5233_p5 = scmp.lt.s32.totalorder %s5227_s10, %s5227_s10 }
   0xc   :  { %p5234_p6 = por %p5233_p5, %p5232_p4 }
   0xe   :  { %p5235_p7 = pnand %p5234_p6, %p5228_p3 }
  0x10   :  { %5238 = shalt.err (!%p5235_p7)
}
  0x11   :  { %s5290_s11 = smov 320   ;;  %s5291_s12 = smov 20  }
  0x12   :  { %28 = dma.hbm_to_vmem [thread:$0]  %s5731_s1, 31360, %s23_s25, [#allocation3], %s5290_s11, %s5290_s11, %s5291_s12  }
  0x13   :  { %s5292_s15 = smov [#allocation5]   ;;  %s5239_s19 = scalar_lea.hbm %s5732_s2, 15360 }
  0x14   :  { %s34_s16 = sshll.u32 %s5292_s15, 4  ;;  %p5240_p8 = scmp.ne.s32.totalorder %s5732_s2, %s5239_s19  ;;  %s35_s16 = int_to_ptr.vmem [resolvable:$true] %s34_s16 }
  0x15   :  { %p5243_p9 = scmp.lt.u32.totalorder %s5239_s19, %s5732_s2 }
  0x17   :  { %p5245_p10 = pnand %p5243_p9, %p5240_p8 }
  0x19   :  { %5248 = shalt.err (!%p5245_p10)
}
  0x1a   :  { %s5249_s24 = scalar_lea.vmem %s35_s16, 15360  ;;  %p5254_p12 = scmp.lt.s32.totalorder %s35_s16, %s35_s16 }
  0x1b   :  { %p5250_p11 = scmp.ne.s32.totalorder %s35_s16, %s5249_s24  ;;  %p5255_p13 = scmp.lt.s32.totalorder %s5249_s24, %s5249_s24 }
  0x1d   :  { %p5256_p0 = por %p5255_p13, %p5254_p12 }
  0x1f   :  { %p5257_p1 = pnand %p5256_p0, %p5250_p11 }
  0x21   :  { %5260 = shalt.err (!%p5257_p1)
}
  0x22   :  { %s5293_s1 = smov 192   ;;  %s5294_s25 = smov 12  }
  0x23   :  { %40 = dma.hbm_to_vmem [thread:$0]  %s5732_s2, 15360, %s35_s16, [#allocation6], %s5293_s1, %s5293_s1, %s5294_s25  }
  0x24   :  { %5283 = dma.done.wait [#allocation3], 31360  }
  0x25   :  { %5284 = vsyncadd [#allocation3], 4294935936 }
  0x26   :  { %5285 = dma.done.wait [#allocation6], 15360  }
  0x27   :  { %5286 = vsyncadd [#allocation6], 4294951936  ;;  %v4618_v0 = vld [vmem:[#allocation2 + $0x4] ss:$20 sps:$4 sm:$0xff]   ;;  %v4620_v1 = vld [vmem:[#allocation2 + $0xc] ss:$20 sps:$4 sm:$0xff]  }
  0x28   :  { %1669 = vmatprep.subr.bf16.mxu0 %v4618_v0  ;;  %v4622_v2 = vld [vmem:[#allocation2] ss:$20 sps:$4 sm:$0xff]   ;;  %v4623_v3 = vld [vmem:[#allocation2 + $0x8] ss:$20 sps:$4 sm:$0xff]   ;;  %1833 = vmatprep.subr.bf16.mxu1 %v4620_v1  ;;  %v4629_v7 = vld [vmem:[#allocation2 + $0x30] ss:$20 sps:$4 sm:$0xff]  }
  0x29   :  { %v4624_v4 = vld [vmem:[#allocation2 + $0x2c] ss:$20 sps:$4 sm:$0xff]   ;;  %1670 = vmatpush1.bf16.msra.mxu0 %v4622_v2  ;;  %1834 = vmatpush1.bf16.msra.mxu1 %v4623_v3  ;;  %v4626_v5 = vld [vmem:[#allocation2 + $0x34] ss:$20 sps:$4 sm:$0xff]   ;;  %v4632_v9 = vld [vmem:[#allocation2 + $0x5c] ss:$20 sps:$4 sm:$0xff]  }
  0x2a   :  { %v4628_v6 = vld [vmem:[#allocation2 + $0x28] ss:$20 sps:$4 sm:$0xff]   ;;  %1671 = vmatprep.subr.bf16.mxu0 %v4624_v4  ;;  %1835 = vmatprep.subr.bf16.mxu1 %v4626_v5  ;;  %v4634_v10 = vld [vmem:[#allocation2 + $0x50] ss:$20 sps:$4 sm:$0xff]   ;;  %v4635_v11 = vld [vmem:[#allocation2 + $0x58] ss:$20 sps:$4 sm:$0xff]  }
  0x2b   :  { %v4630_v8 = vld [vmem:[#allocation2 + $0x54] ss:$20 sps:$4 sm:$0xff]   ;;  %v4636_v12 = vld [vmem:[#allocation2 + $0x7c] ss:$20 sps:$4 sm:$0xff]   ;;  %v4638_v13 = vld [vmem:[#allocation2 + $0x84] ss:$20 sps:$4 sm:$0xff]  }
  0x2c   :  { %v4640_v14 = vld [vmem:[#allocation2 + $0x78] ss:$20 sps:$4 sm:$0xff]   ;;  %v4641_v15 = vld [vmem:[#allocation2 + $0x80] ss:$20 sps:$4 sm:$0xff]   ;;  %v4647_v19 = vld [vmem:[#allocation2 + $0xa8] ss:$20 sps:$4 sm:$0xff]  }
  0x2d   :  { %1672 = vmatpush1.bf16.msra.mxu0 %v4628_v6  ;;  %1836 = vmatpush1.bf16.msra.mxu1 %v4629_v7  ;;  %v4642_v16 = vld [vmem:[#allocation2 + $0xa4] ss:$20 sps:$4 sm:$0xff]   ;;  %v4644_v17 = vld [vmem:[#allocation2 + $0xac] ss:$20 sps:$4 sm:$0xff]   ;;  %v4650_v21 = vld [vmem:[#allocation2 + $0xd4] ss:$20 sps:$4 sm:$0xff]  }
  0x2e   :  { %1673 = vmatprep.subr.bf16.mxu0 %v4630_v8  ;;  %1837 = vmatprep.subr.bf16.mxu1 %v4632_v9  ;;  %v4646_v18 = vld [vmem:[#allocation2 + $0xa0] ss:$20 sps:$4 sm:$0xff]   ;;  %v4652_v22 = vld [vmem:[#allocation2 + $0xc8] ss:$20 sps:$4 sm:$0xff]   ;;  %v4653_v23 = vld [vmem:[#allocation2 + $0xd0] ss:$20 sps:$4 sm:$0xff]  }
  0x2f   :  { %v4648_v20 = vld [vmem:[#allocation2 + $0xcc] ss:$20 sps:$4 sm:$0xff]   ;;  %v4654_v24 = vld [vmem:[#allocation2 + $0xf4] ss:$20 sps:$4 sm:$0xff]   ;;  %v4656_v25 = vld [vmem:[#allocation2 + $0xfc] ss:$20 sps:$4 sm:$0xff]  }
  0x30   :  { %v4658_v26 = vld [vmem:[#allocation2 + $0xf0] ss:$20 sps:$4 sm:$0xff]   ;;  %v4659_v27 = vld [vmem:[#allocation2 + $0xf8] ss:$20 sps:$4 sm:$0xff]   ;;  %v4665_v31 = vld [vmem:[#allocation2 + $0x120] ss:$20 sps:$4 sm:$0xff]  }
  0x31   :  { %1674 = vmatpush1.bf16.msra.mxu0 %v4634_v10  ;;  %1838 = vmatpush1.bf16.msra.mxu1 %v4635_v11  ;;  %v4660_v28 = vld [vmem:[#allocation2 + $0x11c] ss:$20 sps:$4 sm:$0xff]   ;;  %v4662_v29 = vld [vmem:[#allocation2 + $0x124] ss:$20 sps:$4 sm:$0xff]   ;;  %v4668_v33 = vld [vmem:[#allocation2 + $0x14c] ss:$20 sps:$4 sm:$0xff]  }
  0x32   :  { %1675 = vmatprep.subr.bf16.mxu0 %v4636_v12  ;;  %1839 = vmatprep.subr.bf16.mxu1 %v4638_v13  ;;  %v4664_v30 = vld [vmem:[#allocation2 + $0x118] ss:$20 sps:$4 sm:$0xff]   ;;  %v4670_v34 = vld [vmem:[#allocation2 + $0x140] ss:$20 sps:$4 sm:$0xff]   ;;  %v4671_v35 = vld [vmem:[#allocation2 + $0x148] ss:$20 sps:$4 sm:$0xff]  }
  0x33   :  { %v4666_v32 = vld [vmem:[#allocation2 + $0x144] ss:$20 sps:$4 sm:$0xff]   ;;  %v4672_v36 = vld [vmem:[#allocation2 + $0x16c] ss:$20 sps:$4 sm:$0xff]   ;;  %v4674_v37 = vld [vmem:[#allocation2 + $0x174] ss:$20 sps:$4 sm:$0xff]  }
  0x34   :  { %v4676_v38 = vld [vmem:[#allocation2 + $0x168] ss:$20 sps:$4 sm:$0xff]   ;;  %v4677_v39 = vld [vmem:[#allocation2 + $0x170] ss:$20 sps:$4 sm:$0xff]   ;;  %v4683_v43 = vld [vmem:[#allocation2 + $0x198] ss:$20 sps:$4 sm:$0xff]  }
  0x35   :  { %1676 = vmatpush1.bf16.msra.mxu0 %v4640_v14  ;;  %1840 = vmatpush1.bf16.msra.mxu1 %v4641_v15  ;;  %v4678_v40 = vld [vmem:[#allocation2 + $0x194] ss:$20 sps:$4 sm:$0xff]   ;;  %v4680_v41 = vld [vmem:[#allocation2 + $0x19c] ss:$20 sps:$4 sm:$0xff]   ;;  %v4686_v45 = vld [vmem:[#allocation2 + $0x1c4] ss:$20 sps:$4 sm:$0xff]  }
  0x36   :  { %1677 = vmatprep.subr.bf16.mxu0 %v4642_v16  ;;  %1841 = vmatprep.subr.bf16.mxu1 %v4644_v17  ;;  %v4682_v42 = vld [vmem:[#allocation2 + $0x190] ss:$20 sps:$4 sm:$0xff]   ;;  %v57_v46 = vld [vmem:[%s5730_s0 + $0x8] sm:$0xff]  ;;  %v4689_v49 = vld [vmem:[#allocation2 + $0x1c0] ss:$20 sps:$4 sm:$0xff]   ;;  %vm1665_vm0 = vcmask 130048  }
  0x37   :  { %v4684_v44 = vld [vmem:[#allocation2 + $0x1bc] ss:$20 sps:$4 sm:$0xff]   ;;  %v4688_v47 = vld [vmem:[#allocation2 + $0x1b8] ss:$20 sps:$4 sm:$0xff]   ;;  %v5366_v48 = vpack.c.bf16 %v57_v46, %v57_v46  ;;  %v4694_v52 = vld [vmem:[#allocation2 + $0x1e0] ss:$20 sps:$4 sm:$0xff]  }
  0x38   :  { %v4690_v50 = vld [vmem:[#allocation2 + $0x1e4] ss:$20 sps:$4 sm:$0xff]   ;;  %v4692_v51 = vld [vmem:[#allocation2 + $0x1ec] ss:$20 sps:$4 sm:$0xff]   ;;  %v4695_v53 = vld [vmem:[#allocation2 + $0x1e8] ss:$20 sps:$4 sm:$0xff]  }
  0x39   :  { %1678 = vmatpush1.bf16.msra.mxu0 %v4646_v18  ;;  %1842 = vmatpush1.bf16.msra.mxu1 %v4647_v19  ;;  %v4696_v54 = vld [vmem:[#allocation2 + $0x20c] ss:$20 sps:$4 sm:$0xff]   ;;  %v4698_v55 = vld [vmem:[#allocation2 + $0x214] ss:$20 sps:$4 sm:$0xff]   ;;  %v4701_v57 = vld [vmem:[#allocation2 + $0x210] ss:$20 sps:$4 sm:$0xff]  }
  0x3a   :  { %1679 = vmatprep.subr.bf16.mxu0 %v4648_v20  ;;  %1843 = vmatprep.subr.bf16.mxu1 %v4650_v21  ;;  %v4700_v56 = vld [vmem:[#allocation2 + $0x208] ss:$20 sps:$4 sm:$0xff]   ;;  %v4706_v60 = vld [vmem:[#allocation2 + $0x230] ss:$20 sps:$4 sm:$0xff]   ;;  %v4707_v61 = vld [vmem:[#allocation2 + $0x238] ss:$20 sps:$4 sm:$0xff]  }
  0x3b   :  { %1701 = vmatprep.mubr.bf16.mxu0 %v5366_v48  ;;  %1865 = vmatprep.mubr.bf16.mxu1 %v5366_v48  ;;  %v4702_v58 = vld [vmem:[#allocation2 + $0x234] ss:$20 sps:$4 sm:$0xff]   ;;  %v4704_v59 = vld [vmem:[#allocation2 + $0x23c] ss:$20 sps:$4 sm:$0xff]   ;;  %v4710_v63 = vld [vmem:[#allocation2 + $0x264] ss:$20 sps:$4 sm:$0xff]  }
  0x3c   :  { %v4708_v62 = vld [vmem:[#allocation2 + $0x25c] ss:$20 sps:$4 sm:$0xff]   ;;  %v4712_v0 = vld [vmem:[#allocation2 + $0x258] ss:$20 sps:$4 sm:$0xff]   ;;  %v4713_v1 = vld [vmem:[#allocation2 + $0x260] ss:$20 sps:$4 sm:$0xff]  }
  0x3d   :  { %1680 = vmatpush1.bf16.msra.mxu0 %v4652_v22  ;;  %1844 = vmatpush1.bf16.msra.mxu1 %v4653_v23  ;;  %v56_v2 = vld [vmem:[%s5730_s0] sm:$0xff]  ;;  %v4717_v7 = vld [vmem:[#allocation2 + $0x288] ss:$20 sps:$4 sm:$0xff]   ;;  %v4729_v15 = vld [vmem:[#allocation2 + $0x2d8] ss:$20 sps:$4 sm:$0xff]   ;;  %vm5297_vm1 = vmmov 0  }
  0x3e   :  { %1681 = vmatprep.subr.bf16.mxu0 %v4654_v24  ;;  %1845 = vmatprep.subr.bf16.mxu1 %v4656_v25  ;;  %v4716_v3 = vld [vmem:[#allocation2 + $0x284] ss:$20 sps:$4 sm:$0xff]   ;;  %v4719_v4 = vld [vmem:[#allocation2 + $0x28c] ss:$20 sps:$4 sm:$0xff]   ;;  %v5373_v5 = vpack.c.bf16 %v56_v2, %v56_v2  ;;  %v4725_v9 = vld [vmem:[#allocation2 + $0x2b4] ss:$20 sps:$4 sm:$0xff]  }
  0x3f   :  { %v4714_v6 = vld [vmem:[#allocation2 + $0x280] ss:$20 sps:$4 sm:$0xff]   ;;  %v4720_v10 = vld [vmem:[#allocation2 + $0x2a8] ss:$20 sps:$4 sm:$0xff]   ;;  %v4723_v11 = vld [vmem:[#allocation2 + $0x2b0] ss:$20 sps:$4 sm:$0xff]  }
  0x40   :  { %v4722_v8 = vld [vmem:[#allocation2 + $0x2ac] ss:$20 sps:$4 sm:$0xff]   ;;  %v4728_v12 = vld [vmem:[#allocation2 + $0x2d4] ss:$20 sps:$4 sm:$0xff]   ;;  %v4731_v13 = vld [vmem:[#allocation2 + $0x2dc] ss:$20 sps:$4 sm:$0xff]  }
  0x41   :  { %1682 = vmatpush1.bf16.msra.mxu0 %v4658_v26  ;;  %1846 = vmatpush1.bf16.msra.mxu1 %v4659_v27  ;;  %v4726_v14 = vld [vmem:[#allocation2 + $0x2d0] ss:$20 sps:$4 sm:$0xff]   ;;  %v4732_v18 = vld [vmem:[#allocation2 + $0x2f8] ss:$20 sps:$4 sm:$0xff]   ;;  %v4735_v19 = vld [vmem:[#allocation2 + $0x300] ss:$20 sps:$4 sm:$0xff]  }
  0x42   :  { %1683 = vmatprep.subr.bf16.mxu0 %v4660_v28  ;;  %1847 = vmatprep.subr.bf16.mxu1 %v4662_v29  ;;  %v4734_v16 = vld [vmem:[#allocation2 + $0x2fc] ss:$20 sps:$4 sm:$0xff]   ;;  %v4737_v17 = vld [vmem:[#allocation2 + $0x304] ss:$20 sps:$4 sm:$0xff]   ;;  %v4743_v21 = vld [vmem:[#allocation2 + $0x32c] ss:$20 sps:$4 sm:$0xff]  }
  0x43   :  { %v4740_v20 = vld [vmem:[#allocation2 + $0x324] ss:$20 sps:$4 sm:$0xff]   ;;  %v4738_v22 = vld [vmem:[#allocation2 + $0x320] ss:$20 sps:$4 sm:$0xff]   ;;  %v4741_v23 = vld [vmem:[#allocation2 + $0x328] ss:$20 sps:$4 sm:$0xff]  }
  0x44   :  { %v4746_v24 = vld [vmem:[#allocation2 + $0x34c] ss:$20 sps:$4 sm:$0xff]   ;;  %v4749_v25 = vld [vmem:[#allocation2 + $0x354] ss:$20 sps:$4 sm:$0xff]   ;;  %v4747_v27 = vld [vmem:[#allocation2 + $0x350] ss:$20 sps:$4 sm:$0xff]  }
  0x45   :  { %1684 = vmatpush1.bf16.msra.mxu0 %v4664_v30  ;;  %1848 = vmatpush1.bf16.msra.mxu1 %v4665_v31  ;;  %v4744_v26 = vld [vmem:[#allocation2 + $0x348] ss:$20 sps:$4 sm:$0xff]   ;;  %v4750_v31 = vld [vmem:[#allocation2 + $0x370] ss:$20 sps:$4 sm:$0xff]   ;;  %v4801_v2 = vld [vmem:[#allocation2 + $0x4b8] ss:$20 sps:$4 sm:$0xff]  }
  0x46   :  { %1685 = vmatprep.subr.bf16.mxu0 %v4666_v32  ;;  %1849 = vmatprep.subr.bf16.mxu1 %v4668_v33  ;;  %v4752_v28 = vld [vmem:[#allocation2 + $0x374] ss:$20 sps:$4 sm:$0xff]   ;;  %v4755_v29 = vld [vmem:[#allocation2 + $0x37c] ss:$20 sps:$4 sm:$0xff]   ;;  %v4753_v33 = vld [vmem:[#allocation2 + $0x378] ss:$20 sps:$4 sm:$0xff]  }
  0x47   :  { %v59_v30 = vld [vmem:[%s5730_s0 + $0x18] sm:$0xff]  ;;  %v4776_v46 = vld [vmem:[#allocation2 + $0x414] ss:$20 sps:$4 sm:$0xff]   ;;  %s5298_s14 = smov [#allocation7]  }
  0x48   :  { %v5380_v32 = vpack.c.bf16 %v59_v30, %v59_v30  ;;  %v4834_v30 = vld [vmem:[#allocation2 + $0x5a0] ss:$20 sps:$4 sm:$0xff]  }
  0x49   :  { %1686 = vmatpush1.bf16.msra.mxu0 %v4670_v34  ;;  %1850 = vmatpush1.bf16.msra.mxu1 %v4671_v35  ;;  %v4758_v34 = vld [vmem:[#allocation2 + $0x39c] ss:$20 sps:$4 sm:$0xff]   ;;  %v4761_v35 = vld [vmem:[#allocation2 + $0x3a4] ss:$20 sps:$4 sm:$0xff]  }
  0x4a   :  { %1687 = vmatprep.subr.bf16.mxu0 %v4672_v36  ;;  %1851 = vmatprep.subr.bf16.mxu1 %v4674_v37  ;;  %v4756_v36 = vld [vmem:[#allocation2 + $0x398] ss:$20 sps:$4 sm:$0xff]   ;;  %v4759_v37 = vld [vmem:[#allocation2 + $0x3a0] ss:$20 sps:$4 sm:$0xff]  }
  0x4d   :  { %1688 = vmatpush1.bf16.msra.mxu0 %v4676_v38  ;;  %1852 = vmatpush1.bf16.msra.mxu1 %v4677_v39  ;;  %v4764_v38 = vld [vmem:[#allocation2 + $0x3c4] ss:$20 sps:$4 sm:$0xff]   ;;  %v4767_v39 = vld [vmem:[#allocation2 + $0x3cc] ss:$20 sps:$4 sm:$0xff]  }
  0x4e   :  { %1689 = vmatprep.subr.bf16.mxu0 %v4678_v40  ;;  %1853 = vmatprep.subr.bf16.mxu1 %v4680_v41  ;;  %v4762_v40 = vld [vmem:[#allocation2 + $0x3c0] ss:$20 sps:$4 sm:$0xff]   ;;  %v4765_v41 = vld [vmem:[#allocation2 + $0x3c8] ss:$20 sps:$4 sm:$0xff]  }
  0x51   :  { %1690 = vmatpush1.bf16.msra.mxu0 %v4682_v42  ;;  %1854 = vmatpush1.bf16.msra.mxu1 %v4683_v43  ;;  %v4770_v42 = vld [vmem:[#allocation2 + $0x3ec] ss:$20 sps:$4 sm:$0xff]   ;;  %v4773_v43 = vld [vmem:[#allocation2 + $0x3f4] ss:$20 sps:$4 sm:$0xff]  }
  0x52   :  { %1691 = vmatprep.subr.bf16.mxu0 %v4684_v44  ;;  %1855 = vmatprep.subr.bf16.mxu1 %v4686_v45  ;;  %v4768_v44 = vld [vmem:[#allocation2 + $0x3e8] ss:$20 sps:$4 sm:$0xff]   ;;  %v4771_v45 = vld [vmem:[#allocation2 + $0x3f0] ss:$20 sps:$4 sm:$0xff]  }
  0x55   :  { %1692 = vmatpush1.bf16.msra.mxu0 %v4688_v47  ;;  %1856 = vmatpush1.bf16.msra.mxu1 %v4689_v49  ;;  %v4779_v47 = vld [vmem:[#allocation2 + $0x41c] ss:$20 sps:$4 sm:$0xff]  }
  0x56   :  { %1693 = vmatprep.subr.bf16.mxu0 %v4690_v50  ;;  %1857 = vmatprep.subr.bf16.mxu1 %v4692_v51  ;;  %v4774_v49 = vld [vmem:[#allocation2 + $0x410] ss:$20 sps:$4 sm:$0xff]   ;;  %v4777_v50 = vld [vmem:[#allocation2 + $0x418] ss:$20 sps:$4 sm:$0xff]  }
  0x57   :  { %v4782_v51 = vld [vmem:[#allocation2 + $0x43c] ss:$20 sps:$4 sm:$0xff]  }
  0x59   :  { %1694 = vmatpush1.bf16.msra.mxu0 %v4694_v52  ;;  %1858 = vmatpush1.bf16.msra.mxu1 %v4695_v53  ;;  %v4785_v52 = vld [vmem:[#allocation2 + $0x444] ss:$20 sps:$4 sm:$0xff]  }
  0x5a   :  { %1695 = vmatprep.subr.bf16.mxu0 %v4696_v54  ;;  %1859 = vmatprep.subr.bf16.mxu1 %v4698_v55  ;;  %v4780_v53 = vld [vmem:[#allocation2 + $0x438] ss:$20 sps:$4 sm:$0xff]   ;;  %v4783_v54 = vld [vmem:[#allocation2 + $0x440] ss:$20 sps:$4 sm:$0xff]  }
  0x5b   :  { %v4788_v55 = vld [vmem:[#allocation2 + $0x464] ss:$20 sps:$4 sm:$0xff]  }
  0x5d   :  { %1696 = vmatpush1.bf16.msra.mxu0 %v4700_v56  ;;  %1860 = vmatpush1.bf16.msra.mxu1 %v4701_v57  ;;  %v4791_v56 = vld [vmem:[#allocation2 + $0x46c] ss:$20 sps:$4 sm:$0xff]  }
  0x5e   :  { %1697 = vmatprep.subr.bf16.mxu0 %v4702_v58  ;;  %1861 = vmatprep.subr.bf16.mxu1 %v4704_v59  ;;  %v4786_v57 = vld [vmem:[#allocation2 + $0x460] ss:$20 sps:$4 sm:$0xff]   ;;  %v4789_v58 = vld [vmem:[#allocation2 + $0x468] ss:$20 sps:$4 sm:$0xff]  }
  0x5f   :  { %v4794_v59 = vld [vmem:[#allocation2 + $0x48c] ss:$20 sps:$4 sm:$0xff]  }
  0x61   :  { %1698 = vmatpush1.bf16.msra.mxu0 %v4706_v60  ;;  %1862 = vmatpush1.bf16.msra.mxu1 %v4707_v61  ;;  %v4797_v60 = vld [vmem:[#allocation2 + $0x494] ss:$20 sps:$4 sm:$0xff]  }
  0x62   :  { %1699 = vmatprep.subr.bf16.mxu0 %v4708_v62  ;;  %1863 = vmatprep.subr.bf16.mxu1 %v4710_v63  ;;  %v4792_v61 = vld [vmem:[#allocation2 + $0x488] ss:$20 sps:$4 sm:$0xff]   ;;  %v4795_v62 = vld [vmem:[#allocation2 + $0x490] ss:$20 sps:$4 sm:$0xff]  }
  0x63   :  { %v4800_v63 = vld [vmem:[#allocation2 + $0x4b4] ss:$20 sps:$4 sm:$0xff]  }
  0x65   :  { %1700 = vmatpush1.bf16.msra.mxu0 %v4712_v0  ;;  %1864 = vmatpush1.bf16.msra.mxu1 %v4713_v1  ;;  %v4803_v0 = vld [vmem:[#allocation2 + $0x4bc] ss:$20 sps:$4 sm:$0xff]  }
  0x66   :  { %1710 = vmatprep.subr.bf16.mxu0 %v4716_v3  ;;  %1874 = vmatprep.subr.bf16.mxu1 %v4719_v4  ;;  %v4798_v1 = vld [vmem:[#allocation2 + $0x4b0] ss:$20 sps:$4 sm:$0xff]  }
  0x67   :  { %v4806_v3 = vld [vmem:[#allocation2 + $0x4dc] ss:$20 sps:$4 sm:$0xff]   ;;  %v4809_v4 = vld [vmem:[#allocation2 + $0x4e4] ss:$20 sps:$4 sm:$0xff]  }
  0x68   :  { %1702 = vmatmul.mubr.bf16.vlgmr.msra.gmra.mrb[0].mxu0 %v5373_v5  ;;  %1866 = vmatmul.mubr.bf16.vlgmr.msra.gmra.mrb[0].mxu1 %v5373_v5 }
  0x69   :  { %1711 = vmatpush1.bf16.msra.mxu0 %v4714_v6  ;;  %1875 = vmatpush1.bf16.msra.mxu1 %v4717_v7  ;;  %v4804_v6 = vld [vmem:[#allocation2 + $0x4d8] ss:$20 sps:$4 sm:$0xff]   ;;  %v4807_v7 = vld [vmem:[#allocation2 + $0x4e0] ss:$20 sps:$4 sm:$0xff]  }
  0x6a   :  { %1712 = vmatprep.subr.bf16.mxu0 %v4722_v8  ;;  %1876 = vmatprep.subr.bf16.mxu1 %v4725_v9  ;;  %v4812_v8 = vld [vmem:[#allocation2 + $0x504] ss:$20 sps:$4 sm:$0xff]   ;;  %v58_v9 = vld [vmem:[%s5730_s0 + $0x10] sm:$0xff] }
  0x6b   :  { %1742 = vmatprep.mubr.bf16.mxu0 %v5380_v32  ;;  %1906 = vmatprep.mubr.bf16.mxu1 %v5380_v32 }
  0x6d   :  { %1713 = vmatpush1.bf16.msra.mxu0 %v4720_v10  ;;  %1877 = vmatpush1.bf16.msra.mxu1 %v4723_v11  ;;  %v4815_v10 = vld [vmem:[#allocation2 + $0x50c] ss:$20 sps:$4 sm:$0xff]  }
  0x6e   :  { %1714 = vmatprep.subr.bf16.mxu0 %v4728_v12  ;;  %1878 = vmatprep.subr.bf16.mxu1 %v4731_v13  ;;  %v4810_v11 = vld [vmem:[#allocation2 + $0x500] ss:$20 sps:$4 sm:$0xff]   ;;  %v5387_v12 = vpack.c.bf16 %v58_v9, %v58_v9  ;;  %v4813_v13 = vld [vmem:[#allocation2 + $0x508] ss:$20 sps:$4 sm:$0xff]   ;;  %v4894_v9 = vld [vmem:[#allocation2 + $0x730] ss:$20 sps:$4 sm:$0xff]  }
  0x71   :  { %1715 = vmatpush1.bf16.msra.mxu0 %v4726_v14  ;;  %1879 = vmatpush1.bf16.msra.mxu1 %v4729_v15  ;;  %v4818_v14 = vld [vmem:[#allocation2 + $0x52c] ss:$20 sps:$4 sm:$0xff]   ;;  %v4821_v15 = vld [vmem:[#allocation2 + $0x534] ss:$20 sps:$4 sm:$0xff]  }
  0x72   :  { %1716 = vmatprep.subr.bf16.mxu0 %v4734_v16  ;;  %1880 = vmatprep.subr.bf16.mxu1 %v4737_v17  ;;  %v61_v16 = vld [vmem:[%s5730_s0 + $0x28] sm:$0xff] }
  0x73   :  { %v5392_v17 = vpack.c.bf16 %v61_v16, %v61_v16  ;;  %v60_v16 = vld [vmem:[%s5730_s0 + $0x20] sm:$0xff] }
  0x75   :  { %1717 = vmatpush1.bf16.msra.mxu0 %v4732_v18  ;;  %1881 = vmatpush1.bf16.msra.mxu1 %v4735_v19  ;;  %v4816_v18 = vld [vmem:[#allocation2 + $0x528] ss:$20 sps:$4 sm:$0xff]   ;;  %v4819_v19 = vld [vmem:[#allocation2 + $0x530] ss:$20 sps:$4 sm:$0xff]  }
  0x76   :  { %1718 = vmatprep.subr.bf16.mxu0 %v4740_v20  ;;  %1882 = vmatprep.subr.bf16.mxu1 %v4743_v21  ;;  %v4824_v20 = vld [vmem:[#allocation2 + $0x554] ss:$20 sps:$4 sm:$0xff]   ;;  %v4827_v21 = vld [vmem:[#allocation2 + $0x55c] ss:$20 sps:$4 sm:$0xff]  }
  0x79   :  { %1719 = vmatpush1.bf16.msra.mxu0 %v4738_v22  ;;  %1883 = vmatpush1.bf16.msra.mxu1 %v4741_v23  ;;  %v4822_v22 = vld [vmem:[#allocation2 + $0x550] ss:$20 sps:$4 sm:$0xff]   ;;  %v4825_v23 = vld [vmem:[#allocation2 + $0x558] ss:$20 sps:$4 sm:$0xff]  }
  0x7a   :  { %1720 = vmatprep.subr.bf16.mxu0 %v4746_v24  ;;  %1884 = vmatprep.subr.bf16.mxu1 %v4749_v25  ;;  %v4830_v24 = vld [vmem:[#allocation2 + $0x57c] ss:$20 sps:$4 sm:$0xff]   ;;  %v4833_v25 = vld [vmem:[#allocation2 + $0x584] ss:$20 sps:$4 sm:$0xff]  }
  0x7d   :  { %1721 = vmatpush1.bf16.msra.mxu0 %v4744_v26  ;;  %1885 = vmatpush1.bf16.msra.mxu1 %v4747_v27  ;;  %v4828_v26 = vld [vmem:[#allocation2 + $0x578] ss:$20 sps:$4 sm:$0xff]   ;;  %v4831_v27 = vld [vmem:[#allocation2 + $0x580] ss:$20 sps:$4 sm:$0xff]  }
  0x7e   :  { %1722 = vmatprep.subr.bf16.mxu0 %v4752_v28  ;;  %1886 = vmatprep.subr.bf16.mxu1 %v4755_v29  ;;  %v4836_v28 = vld [vmem:[#allocation2 + $0x5a4] ss:$20 sps:$4 sm:$0xff]   ;;  %v4839_v29 = vld [vmem:[#allocation2 + $0x5ac] ss:$20 sps:$4 sm:$0xff]  }
  0x81   :  { %1723 = vmatpush1.bf16.msra.mxu0 %v4750_v31  ;;  %1887 = vmatpush1.bf16.msra.mxu1 %v4753_v33  ;;  %v4837_v31 = vld [vmem:[#allocation2 + $0x5a8] ss:$20 sps:$4 sm:$0xff]   ;;  %v4842_v33 = vld [vmem:[#allocation2 + $0x5cc] ss:$20 sps:$4 sm:$0xff]  }
  0x82   :  { %1724 = vmatprep.subr.bf16.mxu0 %v4758_v34  ;;  %1888 = vmatprep.subr.bf16.mxu1 %v4761_v35  ;;  %v4845_v34 = vld [vmem:[#allocation2 + $0x5d4] ss:$20 sps:$4 sm:$0xff]  }
  0x83   :  { %v4840_v35 = vld [vmem:[#allocation2 + $0x5c8] ss:$20 sps:$4 sm:$0xff]  }
  0x85   :  { %1725 = vmatpush1.bf16.msra.mxu0 %v4756_v36  ;;  %1889 = vmatpush1.bf16.msra.mxu1 %v4759_v37  ;;  %v4843_v36 = vld [vmem:[#allocation2 + $0x5d0] ss:$20 sps:$4 sm:$0xff]   ;;  %v4848_v37 = vld [vmem:[#allocation2 + $0x5f4] ss:$20 sps:$4 sm:$0xff]  }
  0x86   :  { %1726 = vmatprep.subr.bf16.mxu0 %v4764_v38  ;;  %1890 = vmatprep.subr.bf16.mxu1 %v4767_v39  ;;  %v4851_v38 = vld [vmem:[#allocation2 + $0x5fc] ss:$20 sps:$4 sm:$0xff]  }
  0x87   :  { %v4846_v39 = vld [vmem:[#allocation2 + $0x5f0] ss:$20 sps:$4 sm:$0xff]  }
  0x89   :  { %1727 = vmatpush1.bf16.msra.mxu0 %v4762_v40  ;;  %1891 = vmatpush1.bf16.msra.mxu1 %v4765_v41  ;;  %v4849_v40 = vld [vmem:[#allocation2 + $0x5f8] ss:$20 sps:$4 sm:$0xff]   ;;  %v4854_v41 = vld [vmem:[#allocation2 + $0x61c] ss:$20 sps:$4 sm:$0xff]  }
  0x8a   :  { %1728 = vmatprep.subr.bf16.mxu0 %v4770_v42  ;;  %1892 = vmatprep.subr.bf16.mxu1 %v4773_v43  ;;  %v4857_v42 = vld [vmem:[#allocation2 + $0x624] ss:$20 sps:$4 sm:$0xff]  }
  0x8b   :  { %v4852_v43 = vld [vmem:[#allocation2 + $0x618] ss:$20 sps:$4 sm:$0xff]  }
  0x8d   :  { %1729 = vmatpush1.bf16.msra.mxu0 %v4768_v44  ;;  %1893 = vmatpush1.bf16.msra.mxu1 %v4771_v45  ;;  %v4855_v44 = vld [vmem:[#allocation2 + $0x620] ss:$20 sps:$4 sm:$0xff]   ;;  %v4860_v45 = vld [vmem:[#allocation2 + $0x644] ss:$20 sps:$4 sm:$0xff]  }
  0x8e   :  { %1730 = vmatprep.subr.bf16.mxu0 %v4776_v46  ;;  %1894 = vmatprep.subr.bf16.mxu1 %v4779_v47  ;;  %v4863_v46 = vld [vmem:[#allocation2 + $0x64c] ss:$20 sps:$4 sm:$0xff]  }
  0x8f   :  { %v4858_v47 = vld [vmem:[#allocation2 + $0x640] ss:$20 sps:$4 sm:$0xff]  }
  0x91   :  { %1731 = vmatpush1.bf16.msra.mxu0 %v4774_v49  ;;  %1895 = vmatpush1.bf16.msra.mxu1 %v4777_v50  ;;  %v4861_v49 = vld [vmem:[#allocation2 + $0x648] ss:$20 sps:$4 sm:$0xff]   ;;  %v4866_v50 = vld [vmem:[#allocation2 + $0x66c] ss:$20 sps:$4 sm:$0xff]  }
  0x92   :  { %1732 = vmatprep.subr.bf16.mxu0 %v4782_v51  ;;  %1896 = vmatprep.subr.bf16.mxu1 %v4785_v52  ;;  %v4869_v51 = vld [vmem:[#allocation2 + $0x674] ss:$20 sps:$4 sm:$0xff]  }
  0x93   :  { %v4864_v52 = vld [vmem:[#allocation2 + $0x668] ss:$20 sps:$4 sm:$0xff]  }
  0x95   :  { %1733 = vmatpush1.bf16.msra.mxu0 %v4780_v53  ;;  %1897 = vmatpush1.bf16.msra.mxu1 %v4783_v54  ;;  %v4867_v53 = vld [vmem:[#allocation2 + $0x670] ss:$20 sps:$4 sm:$0xff]   ;;  %v4872_v54 = vld [vmem:[#allocation2 + $0x694] ss:$20 sps:$4 sm:$0xff]  }
  0x96   :  { %1734 = vmatprep.subr.bf16.mxu0 %v4788_v55  ;;  %1898 = vmatprep.subr.bf16.mxu1 %v4791_v56  ;;  %v4875_v55 = vld [vmem:[#allocation2 + $0x69c] ss:$20 sps:$4 sm:$0xff]  }
  0x97   :  { %v4870_v56 = vld [vmem:[#allocation2 + $0x690] ss:$20 sps:$4 sm:$0xff]  }
  0x99   :  { %1735 = vmatpush1.bf16.msra.mxu0 %v4786_v57  ;;  %1899 = vmatpush1.bf16.msra.mxu1 %v4789_v58  ;;  %v4873_v57 = vld [vmem:[#allocation2 + $0x698] ss:$20 sps:$4 sm:$0xff]   ;;  %v4878_v58 = vld [vmem:[#allocation2 + $0x6bc] ss:$20 sps:$4 sm:$0xff]  }
  0x9a   :  { %1736 = vmatprep.subr.bf16.mxu0 %v4794_v59  ;;  %1900 = vmatprep.subr.bf16.mxu1 %v4797_v60  ;;  %v4881_v59 = vld [vmem:[#allocation2 + $0x6c4] ss:$20 sps:$4 sm:$0xff]  }
  0x9b   :  { %v4876_v60 = vld [vmem:[#allocation2 + $0x6b8] ss:$20 sps:$4 sm:$0xff]  }
  0x9d   :  { %1737 = vmatpush1.bf16.msra.mxu0 %v4792_v61  ;;  %1901 = vmatpush1.bf16.msra.mxu1 %v4795_v62  ;;  %v4879_v61 = vld [vmem:[#allocation2 + $0x6c0] ss:$20 sps:$4 sm:$0xff]   ;;  %v4884_v62 = vld [vmem:[#allocation2 + $0x6e4] ss:$20 sps:$4 sm:$0xff]  }
  0x9e   :  { %1738 = vmatprep.subr.bf16.mxu0 %v4800_v63  ;;  %1902 = vmatprep.subr.bf16.mxu1 %v4803_v0  ;;  %v4887_v63 = vld [vmem:[#allocation2 + $0x6ec] ss:$20 sps:$4 sm:$0xff]  }
  0x9f   :  { %v4882_v0 = vld [vmem:[#allocation2 + $0x6e0] ss:$20 sps:$4 sm:$0xff]  }
  0xa1   :  { %1739 = vmatpush1.bf16.msra.mxu0 %v4798_v1  ;;  %1903 = vmatpush1.bf16.msra.mxu1 %v4801_v2  ;;  %v4885_v1 = vld [vmem:[#allocation2 + $0x6e8] ss:$20 sps:$4 sm:$0xff]   ;;  %v4890_v2 = vld [vmem:[#allocation2 + $0x70c] ss:$20 sps:$4 sm:$0xff]  }
  0xa2   :  { %1740 = vmatprep.subr.bf16.mxu0 %v4806_v3  ;;  %1904 = vmatprep.subr.bf16.mxu1 %v4809_v4  ;;  %v4893_v3 = vld [vmem:[#allocation2 + $0x714] ss:$20 sps:$4 sm:$0xff]  }
  0xa3   :  { %v4888_v4 = vld [vmem:[#allocation2 + $0x708] ss:$20 sps:$4 sm:$0xff]  }
  0xa5   :  { %1741 = vmatpush1.bf16.msra.mxu0 %v4804_v6  ;;  %1905 = vmatpush1.bf16.msra.mxu1 %v4807_v7  ;;  %v4891_v6 = vld [vmem:[#allocation2 + $0x710] ss:$20 sps:$4 sm:$0xff]   ;;  %v4896_v7 = vld [vmem:[#allocation2 + $0x734] ss:$20 sps:$4 sm:$0xff]  }
  0xa6   :  { %1751 = vmatprep.subr.bf16.mxu0 %v4812_v8  ;;  %1915 = vmatprep.subr.bf16.mxu1 %v4815_v10  ;;  %v4899_v8 = vld [vmem:[#allocation2 + $0x73c] ss:$20 sps:$4 sm:$0xff]   ;;  %v4897_v10 = vld [vmem:[#allocation2 + $0x738] ss:$20 sps:$4 sm:$0xff]  }
  0xa8   :  { %1743 = vmatmul.mubr.bf16.vlgmr.msra.gmra.mrb[0].mxu0 %v5387_v12  ;;  %1907 = vmatmul.mubr.bf16.vlgmr.msra.gmra.mrb[0].mxu1 %v5387_v12 }
  0xa9   :  { %1752 = vmatpush1.bf16.msra.mxu0 %v4810_v11  ;;  %1916 = vmatpush1.bf16.msra.mxu1 %v4813_v13  ;;  %v4902_v11 = vld [vmem:[#allocation2 + $0x75c] ss:$20 sps:$4 sm:$0xff]   ;;  %v4905_v13 = vld [vmem:[#allocation2 + $0x764] ss:$20 sps:$4 sm:$0xff]  }
  0xaa   :  { %1753 = vmatprep.subr.bf16.mxu0 %v4818_v14  ;;  %1917 = vmatprep.subr.bf16.mxu1 %v4821_v15  ;;  %v4900_v14 = vld [vmem:[#allocation2 + $0x758] ss:$20 sps:$4 sm:$0xff]   ;;  %v4903_v15 = vld [vmem:[#allocation2 + $0x760] ss:$20 sps:$4 sm:$0xff]  }
  0xab   :  { %1783 = vmatprep.mubr.bf16.mxu0 %v5392_v17  ;;  %1947 = vmatprep.mubr.bf16.mxu1 %v5392_v17 }
  0xad   :  { %1754 = vmatpush1.bf16.msra.mxu0 %v4816_v18  ;;  %1918 = vmatpush1.bf16.msra.mxu1 %v4819_v19  ;;  %v4908_v18 = vld [vmem:[#allocation2 + $0x784] ss:$20 sps:$4 sm:$0xff]   ;;  %v4911_v19 = vld [vmem:[#allocation2 + $0x78c] ss:$20 sps:$4 sm:$0xff]  }
  0xae   :  { %1755 = vmatprep.subr.bf16.mxu0 %v4824_v20  ;;  %1919 = vmatprep.subr.bf16.mxu1 %v4827_v21  ;;  %v5401_v20 = vpack.c.bf16 %v60_v16, %v60_v16  ;;  %v4906_v21 = vld [vmem:[#allocation2 + $0x780] ss:$20 sps:$4 sm:$0xff]   ;;  %v4975_v16 = vld [vmem:[#allocation5 + $0x64] ss:$12 sps:$4 sm:$0xff]  }
  0xb1   :  { %1756 = vmatpush1.bf16.msra.mxu0 %v4822_v22  ;;  %1920 = vmatpush1.bf16.msra.mxu1 %v4825_v23  ;;  %v4909_v22 = vld [vmem:[#allocation2 + $0x788] ss:$20 sps:$4 sm:$0xff]   ;;  %v4912_v23 = vld [vmem:[#allocation2 + $0x150] ss:$20 sps:$4 sm:$0xff]  }
  0xb2   :  { %1757 = vmatprep.subr.bf16.mxu0 %v4830_v24  ;;  %1921 = vmatprep.subr.bf16.mxu1 %v4833_v25  ;;  %v4928_v24 = vld [vmem:[#allocation2 + $0x3d0] ss:$20 sps:$4 sm:$0xff]   ;;  %v5295_v25 = vmov 0  }
  0xb5   :  { %1758 = vmatpush1.bf16.msra.mxu0 %v4828_v26  ;;  %1922 = vmatpush1.bf16.msra.mxu1 %v4831_v27  ;;  %v62_v26 = vld [vmem:[%s5730_s0 + $0x30] sm:$0xff] }
  0xb6   :  { %1759 = vmatprep.subr.bf16.mxu0 %v4836_v28  ;;  %1923 = vmatprep.subr.bf16.mxu1 %v4839_v29  ;;  %v5410_v27 = vpack.c.bf16 %v62_v26, %v62_v26  ;;  %v4913_v28 = vld [vmem:[#allocation2 + $0x10] ss:$20 sps:$4 sm:$0xff]   ;;  %v4981_v26 = vld [vmem:[#allocation5 + $0x94] ss:$12 sps:$4 sm:$0xff]  }
  0xb7   :  { %v4929_v29 = vld [vmem:[#allocation2 + $0x290] ss:$20 sps:$4 sm:$0xff]  }
  0xb9   :  { %1760 = vmatpush1.bf16.msra.mxu0 %v4834_v30  ;;  %1924 = vmatpush1.bf16.msra.mxu1 %v4837_v31  ;;  %v4914_v30 = vld [vmem:[#allocation2 + $0x178] ss:$20 sps:$4 sm:$0xff]  }
  0xba   :  { %1761 = vmatprep.subr.bf16.mxu0 %v4842_v33  ;;  %1925 = vmatprep.subr.bf16.mxu1 %v4845_v34  ;;  %v4931_v31 = vld [vmem:[#allocation2 + $0x3f8] ss:$20 sps:$4 sm:$0xff]   ;;  %v4916_v34 = vld [vmem:[#allocation2 + $0x1a0] ss:$20 sps:$4 sm:$0xff]  }
  0xbb   :  { %v4915_v33 = vld [vmem:[#allocation2 + $0x38] ss:$20 sps:$4 sm:$0xff]  }
  0xbd   :  { %1762 = vmatpush1.bf16.msra.mxu0 %v4840_v35  ;;  %1926 = vmatpush1.bf16.msra.mxu1 %v4843_v36  ;;  %v4933_v35 = vld [vmem:[#allocation2 + $0x2b8] ss:$20 sps:$4 sm:$0xff]   ;;  %v4935_v36 = vld [vmem:[#allocation2 + $0x420] ss:$20 sps:$4 sm:$0xff]  }
  0xbe   :  { %1763 = vmatprep.subr.bf16.mxu0 %v4848_v37  ;;  %1927 = vmatprep.subr.bf16.mxu1 %v4851_v38  ;;  %v4917_v37 = vld [vmem:[#allocation2 + $0x60] ss:$20 sps:$4 sm:$0xff]   ;;  %v4918_v38 = vld [vmem:[#allocation2 + $0x1c8] ss:$20 sps:$4 sm:$0xff]  }
  0xc1   :  { %1764 = vmatpush1.bf16.msra.mxu0 %v4846_v39  ;;  %1928 = vmatpush1.bf16.msra.mxu1 %v4849_v40  ;;  %v4937_v39 = vld [vmem:[#allocation2 + $0x2e0] ss:$20 sps:$4 sm:$0xff]   ;;  %v4939_v40 = vld [vmem:[#allocation2 + $0x448] ss:$20 sps:$4 sm:$0xff]  }
  0xc2   :  { %1765 = vmatprep.subr.bf16.mxu0 %v4854_v41  ;;  %1929 = vmatprep.subr.bf16.mxu1 %v4857_v42  ;;  %v4919_v41 = vld [vmem:[#allocation2 + $0x88] ss:$20 sps:$4 sm:$0xff]  }
  0xc3   :  { %v4941_v42 = vld [vmem:[#allocation2 + $0x308] ss:$20 sps:$4 sm:$0xff]  }
  0xc5   :  { %1766 = vmatpush1.bf16.msra.mxu0 %v4852_v43  ;;  %1930 = vmatpush1.bf16.msra.mxu1 %v4855_v44  ;;  %v4920_v43 = vld [vmem:[#allocation2 + $0x1f0] ss:$20 sps:$4 sm:$0xff]  }
  0xc6   :  { %1767 = vmatprep.subr.bf16.mxu0 %v4860_v45  ;;  %1931 = vmatprep.subr.bf16.mxu1 %v4863_v46  ;;  %v4943_v44 = vld [vmem:[#allocation2 + $0x470] ss:$20 sps:$4 sm:$0xff]   ;;  %v4922_v46 = vld [vmem:[#allocation2 + $0x218] ss:$20 sps:$4 sm:$0xff]  }
  0xc7   :  { %v4945_v45 = vld [vmem:[#allocation2 + $0x330] ss:$20 sps:$4 sm:$0xff]  }
  0xc9   :  { %1768 = vmatpush1.bf16.msra.mxu0 %v4858_v47  ;;  %1932 = vmatpush1.bf16.msra.mxu1 %v4861_v49  ;;  %v4947_v47 = vld [vmem:[#allocation2 + $0x498] ss:$20 sps:$4 sm:$0xff]  }
  0xca   :  { %1769 = vmatprep.subr.bf16.mxu0 %v4866_v50  ;;  %1933 = vmatprep.subr.bf16.mxu1 %v4869_v51  ;;  %v4949_v49 = vld [vmem:[#allocation2 + $0x358] ss:$20 sps:$4 sm:$0xff]   ;;  %v4924_v50 = vld [vmem:[#allocation2 + $0x240] ss:$20 sps:$4 sm:$0xff]  }
  0xcb   :  { %v4951_v51 = vld [vmem:[#allocation2 + $0x4c0] ss:$20 sps:$4 sm:$0xff]  }
  0xcd   :  { %1770 = vmatpush1.bf16.msra.mxu0 %v4864_v52  ;;  %1934 = vmatpush1.bf16.msra.mxu1 %v4867_v53  ;;  %v4925_v52 = vld [vmem:[#allocation2 + $0x100] ss:$20 sps:$4 sm:$0xff]  }
  0xce   :  { %1771 = vmatprep.subr.bf16.mxu0 %v4872_v54  ;;  %1935 = vmatprep.subr.bf16.mxu1 %v4875_v55  ;;  %v4953_v53 = vld [vmem:[#allocation2 + $0x380] ss:$20 sps:$4 sm:$0xff]   ;;  %v4926_v54 = vld [vmem:[#allocation2 + $0x268] ss:$20 sps:$4 sm:$0xff]  }
  0xcf   :  { %v4955_v55 = vld [vmem:[#allocation2 + $0x4e8] ss:$20 sps:$4 sm:$0xff]  }
  0xd1   :  { %1772 = vmatpush1.bf16.msra.mxu0 %v4870_v56  ;;  %1936 = vmatpush1.bf16.msra.mxu1 %v4873_v57  ;;  %v4927_v56 = vld [vmem:[#allocation2 + $0x128] ss:$20 sps:$4 sm:$0xff]  }
  0xd2   :  { %1773 = vmatprep.subr.bf16.mxu0 %v4878_v58  ;;  %1937 = vmatprep.subr.bf16.mxu1 %v4881_v59  ;;  %v4957_v57 = vld [vmem:[#allocation2 + $0x3a8] ss:$20 sps:$4 sm:$0xff]   ;;  %v4930_v58 = vld [vmem:[#allocation2 + $0x650] ss:$20 sps:$4 sm:$0xff]  }
  0xd3   :  { %v4932_v59 = vld [vmem:[#allocation2 + $0x510] ss:$20 sps:$4 sm:$0xff]  }
  0xd5   :  { %1774 = vmatpush1.bf16.msra.mxu0 %v4876_v60  ;;  %1938 = vmatpush1.bf16.msra.mxu1 %v4879_v61  ;;  %v4934_v60 = vld [vmem:[#allocation2 + $0x678] ss:$20 sps:$4 sm:$0xff]   ;;  %v4960_v61 = vld [vmem:[#allocation2 + $0x790] ss:$20 sps:$4 sm:$0xff]  }
  0xd6   :  { %1775 = vmatprep.subr.bf16.mxu0 %v4884_v62  ;;  %1939 = vmatprep.subr.bf16.mxu1 %v4887_v63  ;;  %v4963_v62 = vld [vmem:[#allocation5 + $0x4] ss:$12 sps:$4 sm:$0xff]   ;;  %v5296_v63 = vmov 0.0  }
  0xd9   :  { %1776 = vmatpush1.bf16.msra.mxu0 %v4882_v0  ;;  %1940 = vmatpush1.bf16.msra.mxu1 %v4885_v1  ;;  %v4936_v0 = vld [vmem:[#allocation2 + $0x538] ss:$20 sps:$4 sm:$0xff]   ;;  %v4938_v1 = vld [vmem:[#allocation2 + $0x6a0] ss:$20 sps:$4 sm:$0xff]  }
  0xda   :  { %1777 = vmatprep.subr.bf16.mxu0 %v4890_v2  ;;  %1941 = vmatprep.subr.bf16.mxu1 %v4893_v3  ;;  %v4940_v2 = vld [vmem:[#allocation2 + $0x560] ss:$20 sps:$4 sm:$0xff]  }
  0xdb   :  { %v4961_v3 = vld [vmem:[#allocation5] ss:$12 sps:$4 sm:$0xff]  }
  0xdd   :  { %1778 = vmatpush1.bf16.msra.mxu0 %v4888_v4  ;;  %1942 = vmatpush1.bf16.msra.mxu1 %v4891_v6  ;;  %v4942_v4 = vld [vmem:[#allocation2 + $0x6c8] ss:$20 sps:$4 sm:$0xff]   ;;  %v4966_v6 = vld [vmem:[#allocation5 + $0x1c] ss:$12 sps:$4 sm:$0xff]  }
  0xde   :  { %1779 = vmatprep.subr.bf16.mxu0 %v4896_v7  ;;  %1943 = vmatprep.subr.bf16.mxu1 %v4899_v8  ;;  %v4964_v7 = vld [vmem:[#allocation5 + $0x18] ss:$12 sps:$4 sm:$0xff]   ;;  %v4946_v8 = vld [vmem:[#allocation2 + $0x6f0] ss:$20 sps:$4 sm:$0xff]  }
  0xe1   :  { %1780 = vmatpush1.bf16.msra.mxu0 %v4894_v9  ;;  %1944 = vmatpush1.bf16.msra.mxu1 %v4897_v10  ;;  %v4967_v9 = vld [vmem:[#allocation5 + $0x30] ss:$12 sps:$4 sm:$0xff]  }
  0xe2   :  { %1781 = vmatprep.subr.bf16.mxu0 %v4902_v11  ;;  %1945 = vmatprep.subr.bf16.mxu1 %v4905_v13  ;;  %v4950_v10 = vld [vmem:[#allocation2 + $0x718] ss:$20 sps:$4 sm:$0xff]   ;;  %v4972_v11 = vld [vmem:[#allocation5 + $0x4c] ss:$12 sps:$4 sm:$0xff]  }
  0xe3   :  { %v4952_v13 = vld [vmem:[#allocation2 + $0x5d8] ss:$20 sps:$4 sm:$0xff]  }
  0xe5   :  { %1782 = vmatpush1.bf16.msra.mxu0 %v4900_v14  ;;  %1946 = vmatpush1.bf16.msra.mxu1 %v4903_v15  ;;  %v4970_v14 = vld [vmem:[#allocation5 + $0x48] ss:$12 sps:$4 sm:$0xff]   ;;  %v4954_v15 = vld [vmem:[#allocation2 + $0x740] ss:$20 sps:$4 sm:$0xff]  }
  0xe6   :  { %1792 = vmatprep.subr.bf16.mxu0 %v4908_v18  ;;  %1956 = vmatprep.subr.bf16.mxu1 %v4911_v19  ;;  %v4956_v18 = vld [vmem:[#allocation2 + $0x600] ss:$20 sps:$4 sm:$0xff]  }
  0xe7   :  { %v4973_v19 = vld [vmem:[#allocation5 + $0x60] ss:$12 sps:$4 sm:$0xff]  }
  0xe8   :  { %1784 = vmatmul.mubr.bf16.vlgmr.msra.gmra.mrb[0].mxu0 %v5401_v20  ;;  %1948 = vmatmul.mubr.bf16.vlgmr.msra.gmra.mrb[0].mxu1 %v5401_v20 }
  0xe9   :  { %1793 = vmatpush1.bf16.msra.mxu0 %v4906_v21  ;;  %1957 = vmatpush1.bf16.msra.mxu1 %v4909_v22  ;;  %v4958_v21 = vld [vmem:[#allocation2 + $0x768] ss:$20 sps:$4 sm:$0xff]   ;;  %v4978_v22 = vld [vmem:[#allocation5 + $0x7c] ss:$12 sps:$4 sm:$0xff]  }
  0xea   :  { %1824 = vmatprep.mubr.bf16.mxu0 %v5295_v25  ;;  %1988 = vmatprep.mubr.bf16.mxu1 %v5295_v25 }
  0xeb   :  { %4366 = vmatprep.subr.bf16.mxu0 %v4912_v23  ;;  %4388 = vmatprep.subr.bf16.mxu1 %v4928_v24  ;;  %v4959_v23 = vld [vmem:[#allocation2 + $0x628] ss:$20 sps:$4 sm:$0xff]   ;;  %v4976_v24 = vld [vmem:[#allocation5 + $0x78] ss:$12 sps:$4 sm:$0xff]  }
  0xf4   :  { %4169 = vmatmul.mubr.msk.bf16.vlgmr.msra.gmra.mrb[0].mxu0 %vm1665_vm0, %v5410_v27  ;;  %4170 = vmatmul.mubr.msk.bf16.vlgmr.msra.gmra.mrb[0].mxu1 %vm1665_vm0, %v5410_v27 }
  0xf5   :  { %4367 = vmatpush3.bf16.msra.mxu0 %v4913_v28  ;;  %4389 = vmatpush3.bf16.msra.mxu1 %v4929_v29  ;;  %v4979_v28 = vld [vmem:[#allocation5 + $0x90] ss:$12 sps:$4 sm:$0xff]   ;;  %v4989_v29 = vld [vmem:[#allocation5 + $0x8] ss:$12 sps:$4 sm:$0xff]  }
  0xf6   :  { %4368 = vmatprep.subr.bf16.mxu0 %v4914_v30  ;;  %2029 = vmatprep.mubr.bf16.mxu0 %v5366_v48  ;;  %v4921_v48 = vld [vmem:[#allocation2 + $0xb0] ss:$20 sps:$4 sm:$0xff]   ;;  %v4984_v30 = vld [vmem:[#allocation5 + $0xac] ss:$12 sps:$4 sm:$0xff]  }
  0xf7   :  { %4390 = vmatprep.subr.bf16.mxu1 %v4931_v31  ;;  %2069 = vmatprep.mubr.bf16.mxu1 %v5380_v32  ;;  %v4923_v32 = vld [vmem:[#allocation2 + $0xd8] ss:$20 sps:$4 sm:$0xff]   ;;  %v4993_v31 = vld [vmem:[#allocation5 + $0xe0] ss:$12 sps:$4 sm:$0xff]  }
  0xf9   :  { %4369 = vmatpush3.bf16.msra.mxu0 %v4915_v33  ;;  %4391 = vmatpush3.bf16.msra.mxu1 %v4933_v35  ;;  %v4982_v33 = vld [vmem:[#allocation5 + $0xa8] ss:$12 sps:$4 sm:$0xff]   ;;  %v4987_v35 = vld [vmem:[#allocation5 + $0xc4] ss:$12 sps:$4 sm:$0xff]  }
  0xfa   :  { %4370 = vmatprep.subr.bf16.mxu0 %v4916_v34  ;;  %4392 = vmatprep.subr.bf16.mxu1 %v4935_v36  ;;  %v4994_v34 = vld [vmem:[#allocation5 + $0x20] ss:$12 sps:$4 sm:$0xff]   ;;  %v4998_v36 = vld [vmem:[#allocation5 + $0xf8] ss:$12 sps:$4 sm:$0xff]  }
  0xfd   :  { %4371 = vmatpush3.bf16.msra.mxu0 %v4917_v37  ;;  %4393 = vmatpush3.bf16.msra.mxu1 %v4937_v39  ;;  %v4985_v37 = vld [vmem:[#allocation5 + $0xc0] ss:$12 sps:$4 sm:$0xff]   ;;  %v4992_v39 = vld [vmem:[#allocation5 + $0xdc] ss:$12 sps:$4 sm:$0xff]  }
  0xfe   :  { %4372 = vmatprep.subr.bf16.mxu0 %v4918_v38  ;;  %4394 = vmatprep.subr.bf16.mxu1 %v4939_v40  ;;  %v4999_v38 = vld [vmem:[#allocation5 + $0x38] ss:$12 sps:$4 sm:$0xff]   ;;  %v5003_v40 = vld [vmem:[#allocation5 + $0x110] ss:$12 sps:$4 sm:$0xff]  }
 0x101   :  { %4373 = vmatpush3.bf16.msra.mxu0 %v4919_v41  ;;  %4395 = vmatpush3.bf16.msra.mxu1 %v4941_v42  ;;  %v4990_v41 = vld [vmem:[#allocation5 + $0xd8] ss:$12 sps:$4 sm:$0xff]   ;;  %v5004_v42 = vld [vmem:[#allocation5 + $0x50] ss:$12 sps:$4 sm:$0xff]  }
 0x102   :  { %4374 = vmatprep.subr.bf16.mxu0 %v4920_v43  ;;  %4396 = vmatprep.subr.bf16.mxu1 %v4943_v44  ;;  %v5008_v43 = vld [vmem:[#allocation5 + $0x128] ss:$12 sps:$4 sm:$0xff]   ;;  %v4995_v44 = vld [vmem:[#allocation5 + $0xf0] ss:$12 sps:$4 sm:$0xff]  }
 0x105   :  { %4375 = vmatpush3.bf16.msra.mxu0 %v4921_v48  ;;  %4397 = vmatpush3.bf16.msra.mxu1 %v4945_v45  ;;  %v5009_v48 = vld [vmem:[#allocation5 + $0x68] ss:$12 sps:$4 sm:$0xff]   ;;  %v5002_v45 = vld [vmem:[#allocation5 + $0x10c] ss:$12 sps:$4 sm:$0xff]  }
 0x106   :  { %4376 = vmatprep.subr.bf16.mxu0 %v4922_v46  ;;  %4398 = vmatprep.subr.bf16.mxu1 %v4947_v47  ;;  %v5013_v46 = vld [vmem:[#allocation5 + $0x140] ss:$12 sps:$4 sm:$0xff]   ;;  %v5000_v47 = vld [vmem:[#allocation5 + $0x108] ss:$12 sps:$4 sm:$0xff]  }
 0x109   :  { %4377 = vmatpush3.bf16.msra.mxu0 %v4923_v32  ;;  %4399 = vmatpush3.bf16.msra.mxu1 %v4949_v49  ;;  %v5014_v32 = vld [vmem:[#allocation5 + $0x80] ss:$12 sps:$4 sm:$0xff]   ;;  %v5007_v49 = vld [vmem:[#allocation5 + $0x124] ss:$12 sps:$4 sm:$0xff]  }
 0x10a   :  { %4378 = vmatprep.subr.bf16.mxu0 %v4924_v50  ;;  %4400 = vmatprep.subr.bf16.mxu1 %v4951_v51  ;;  %v5018_v50 = vld [vmem:[#allocation5 + $0x158] ss:$12 sps:$4 sm:$0xff]   ;;  %v5005_v51 = vld [vmem:[#allocation5 + $0x120] ss:$12 sps:$4 sm:$0xff]  }
 0x10d   :  { %4379 = vmatpush3.bf16.msra.mxu0 %v4925_v52  ;;  %4401 = vmatpush3.bf16.msra.mxu1 %v4953_v53  ;;  %v5019_v52 = vld [vmem:[#allocation5 + $0x98] ss:$12 sps:$4 sm:$0xff]   ;;  %v5012_v53 = vld [vmem:[#allocation5 + $0x13c] ss:$12 sps:$4 sm:$0xff]  }
 0x10e   :  { %4380 = vmatprep.subr.bf16.mxu0 %v4926_v54  ;;  %4402 = vmatprep.subr.bf16.mxu1 %v4955_v55  ;;  %v5023_v54 = vld [vmem:[#allocation5 + $0x170] ss:$12 sps:$4 sm:$0xff]   ;;  %v5010_v55 = vld [vmem:[#allocation5 + $0x138] ss:$12 sps:$4 sm:$0xff]  }
 0x111   :  { %4381 = vmatpush3.bf16.msra.mxu0 %v4927_v56  ;;  %4403 = vmatpush3.bf16.msra.mxu1 %v4957_v57  ;;  %v5024_v56 = vld [vmem:[#allocation5 + $0xb0] ss:$12 sps:$4 sm:$0xff]   ;;  %v5017_v57 = vld [vmem:[#allocation5 + $0x154] ss:$12 sps:$4 sm:$0xff]  }
 0x112   :  { %4410 = vmatprep.subr.bf16.mxu0 %v4930_v58  ;;  %4518 = vmatprep.subr.bf16.mxu1 %v5296_v63  ;;  %v5028_v58 = vld [vmem:[#allocation5 + $0x248] ss:$12 sps:$4 sm:$0xff]  }
 0x114   :  { %2030 = vmatmul.mubr.bf16.vlgmr.msra.gmra.mrb[4].mxu0 %v5373_v5  ;;  %2070 = vmatmul.mubr.bf16.vlgmr.msra.gmra.mrb[4].mxu1 %v5387_v12  ;;  %v4944_v5 = vld [vmem:[#allocation2 + $0x588] ss:$20 sps:$4 sm:$0xff]  }
 0x115   :  { %4411 = vmatpush3.bf16.msra.mxu0 %v4932_v59  ;;  %2109 = vmatprep.mubr.bf16.mxu0 %v5392_v17  ;;  %v4969_v12 = vld [vmem:[#allocation5 + $0x34] ss:$12 sps:$4 sm:$0xff]   ;;  %v4948_v17 = vld [vmem:[#allocation2 + $0x5b0] ss:$20 sps:$4 sm:$0xff]  }
 0x116   :  { %4412 = vmatprep.subr.bf16.mxu0 %v4934_v60  ;;  %4519 = vmatpush3.bf16.msra.mxu1 %v4960_v61  ;;  %v5015_v59 = vld [vmem:[#allocation5 + $0x150] ss:$12 sps:$4 sm:$0xff]   ;;  %v5022_v60 = vld [vmem:[#allocation5 + $0x16c] ss:$12 sps:$4 sm:$0xff]   ;;  %v5020_v61 = vld [vmem:[#allocation5 + $0x168] ss:$12 sps:$4 sm:$0xff]  }
 0x117   :  { %4520 = vmatprep.mubr.msk.bf16.mxu1 %vm5297_vm1, %v5296_v63  ;;  %2984 = vmatprep.subr.bf16.mxu1 %v4963_v62  ;;  %v5027_v62 = vld [vmem:[#allocation5 + $0x184] ss:$12 sps:$4 sm:$0xff]  }
 0x119   :  { %4413 = vmatpush3.bf16.msra.mxu0 %v4936_v0  ;;  %v366_v0 = vlaneseq }
 0x11a   :  { %4414 = vmatprep.subr.bf16.mxu0 %v4938_v1 }
 0x11b   :  { %v5427_v1 = vshrl.u32 %v366_v0, 7 }
 0x11c   :  { %4521 = vmatmul.mubr.msk.bf16.vlgmr.msra.gmra.mrb[8].mxu1 %vm1665_vm0, %v5410_v27  ;;  %v4988_v27 = vld [vmem:[#allocation5 + $0xc8] ss:$12 sps:$4 sm:$0xff]  }
 0x11d   :  { %4415 = vmatpush3.bf16.msra.mxu0 %v4940_v2  ;;  %2985 = vmatpush1.bf16.msra.mxu1 %v4961_v3  ;;  %v5430_v2 = vsub.s32 0, %v5427_v1  ;;  %v5435_v3 = vld [vmem:[%s5736_s6] sm:$0x1f] }
 0x11e   :  { %4416 = vmatprep.subr.bf16.mxu0 %v4942_v4  ;;  %2986 = vmatprep.subr.bf16.mxu1 %v4966_v6  ;;  %v5438_v4 = vsub.s32 1, %v5427_v1  ;;  %v380_v6 = vsub.s32 3, %v5427_v1 }
 0x121   :  { %4417 = vmatpush3.bf16.msra.mxu0 %v4944_v5  ;;  %2987 = vmatpush1.bf16.msra.mxu1 %v4964_v7  ;;  %v369_v5 = vrot.slane %v5435_v3, %v5430_v2  ;;  %v373_v7 = vrot.slane %v5435_v3, %v5438_v4 }
 0x122   :  { %4418 = vmatprep.subr.bf16.mxu0 %v4946_v8  ;;  %2988 = vmatprep.subr.bf16.mxu1 %v4969_v12  ;;  %v381_v8 = vrot.slane %v5435_v3, %v380_v6  ;;  %v5060_v6 = vld [vmem:[#allocation5 + $0x228] ss:$12 sps:$4 sm:$0xff]  }
 0x125   :  { %4419 = vmatpush3.bf16.msra.mxu0 %v4948_v17  ;;  %2989 = vmatpush1.bf16.msra.mxu1 %v4967_v9 }
 0x126   :  { %4420 = vmatprep.subr.bf16.mxu0 %v4950_v10  ;;  %2990 = vmatprep.subr.bf16.mxu1 %v4972_v11 }
 0x129   :  { %4421 = vmatpush3.bf16.msra.mxu0 %v4952_v13  ;;  %2991 = vmatpush1.bf16.msra.mxu1 %v4970_v14 }
 0x12a   :  { %4422 = vmatprep.subr.bf16.mxu0 %v4954_v15  ;;  %2992 = vmatprep.subr.bf16.mxu1 %v4975_v16 }
 0x12d   :  { %4423 = vmatpush3.bf16.msra.mxu0 %v4956_v18  ;;  %2993 = vmatpush1.bf16.msra.mxu1 %v4973_v19 }
 0x12e   :  { %4424 = vmatprep.subr.bf16.mxu0 %v4958_v21  ;;  %2994 = vmatprep.subr.bf16.mxu1 %v4978_v22 }
 0x131   :  { %4425 = vmatpush3.bf16.msra.mxu0 %v4959_v23  ;;  %2995 = vmatpush1.bf16.msra.mxu1 %v4976_v24 }
 0x132   :  { %2996 = vmatprep.subr.bf16.mxu1 %v4981_v26  ;;  %4434 = vmatprep.subr.bf16.mxu0 %v4988_v27  ;;  %v5025_v26 = vld [vmem:[#allocation5 + $0x180] ss:$12 sps:$4 sm:$0xff]   ;;  %v5029_v27 = vld [vmem:[#allocation5 + $0x188] ss:$12 sps:$4 sm:$0xff]  }
 0x134   :  { %2110 = vmatmul.mubr.bf16.vlgmr.msra.gmra.mrb[8].mxu0 %v5401_v20  ;;  %v4997_v20 = vld [vmem:[#allocation5 + $0xf4] ss:$12 sps:$4 sm:$0xff]  }
 0x135   :  { %2997 = vmatpush1.bf16.msra.mxu1 %v4979_v28  ;;  %4435 = vmatpush3.bf16.msra.mxu0 %v4989_v29  ;;  %v5032_v29 = vld [vmem:[#allocation5 + $0x19c] ss:$12 sps:$4 sm:$0xff]  }
 0x136   :  { %2998 = vmatprep.subr.bf16.mxu1 %v4984_v30  ;;  %4436 = vmatprep.subr.bf16.mxu0 %v4993_v31  ;;  %v5033_v30 = vld [vmem:[#allocation5 + $0x260] ss:$12 sps:$4 sm:$0xff]  }
 0x139   :  { %2999 = vmatpush1.bf16.msra.mxu1 %v4982_v33  ;;  %4437 = vmatpush3.bf16.msra.mxu0 %v4994_v34  ;;  %v5030_v33 = vld [vmem:[#allocation5 + $0x198] ss:$12 sps:$4 sm:$0xff]   ;;  %v5034_v34 = vld [vmem:[#allocation5 + $0x1a0] ss:$12 sps:$4 sm:$0xff]  }
 0x13a   :  { %3000 = vmatprep.subr.bf16.mxu1 %v4987_v35  ;;  %4438 = vmatprep.subr.bf16.mxu0 %v4998_v36  ;;  %v5037_v35 = vld [vmem:[#allocation5 + $0x1b4] ss:$12 sps:$4 sm:$0xff]   ;;  %v5038_v36 = vld [vmem:[#allocation5 + $0x278] ss:$12 sps:$4 sm:$0xff]  }
 0x13d   :  { %3001 = vmatpush1.bf16.msra.mxu1 %v4985_v37  ;;  %4439 = vmatpush3.bf16.msra.mxu0 %v4999_v38  ;;  %v5035_v37 = vld [vmem:[#allocation5 + $0x1b0] ss:$12 sps:$4 sm:$0xff]   ;;  %v5039_v38 = vld [vmem:[#allocation5 + $0x1b8] ss:$12 sps:$4 sm:$0xff]  }
 0x13e   :  { %3002 = vmatprep.subr.bf16.mxu1 %v4992_v39  ;;  %4440 = vmatprep.subr.bf16.mxu0 %v5003_v40  ;;  %v5042_v39 = vld [vmem:[#allocation5 + $0x1cc] ss:$12 sps:$4 sm:$0xff]   ;;  %v5043_v40 = vld [vmem:[#allocation5 + $0x290] ss:$12 sps:$4 sm:$0xff]  }
 0x141   :  { %3003 = vmatpush1.bf16.msra.mxu1 %v4990_v41  ;;  %4441 = vmatpush3.bf16.msra.mxu0 %v5004_v42  ;;  %v5040_v41 = vld [vmem:[#allocation5 + $0x1c8] ss:$12 sps:$4 sm:$0xff]   ;;  %v5044_v42 = vld [vmem:[#allocation5 + $0x1d0] ss:$12 sps:$4 sm:$0xff]  }
 0x142   :  { %3004 = vmatprep.subr.bf16.mxu1 %v4997_v20  ;;  %4442 = vmatprep.subr.bf16.mxu0 %v5008_v43  ;;  %v5047_v20 = vld [vmem:[#allocation5 + $0x1e4] ss:$12 sps:$4 sm:$0xff]   ;;  %v5048_v43 = vld [vmem:[#allocation5 + $0x2a8] ss:$12 sps:$4 sm:$0xff]  }
 0x145   :  { %3005 = vmatpush1.bf16.msra.mxu1 %v4995_v44  ;;  %4443 = vmatpush3.bf16.msra.mxu0 %v5009_v48  ;;  %v5045_v44 = vld [vmem:[#allocation5 + $0x1e0] ss:$12 sps:$4 sm:$0xff]   ;;  %v5049_v48 = vld [vmem:[#allocation5 + $0x1e8] ss:$12 sps:$4 sm:$0xff]  }
 0x146   :  { %3006 = vmatprep.subr.bf16.mxu1 %v5002_v45  ;;  %4444 = vmatprep.subr.bf16.mxu0 %v5013_v46  ;;  %v376_v45 = vsub.s32 2, %v5427_v1  ;;  %v5052_v46 = vld [vmem:[#allocation5 + $0x1fc] ss:$12 sps:$4 sm:$0xff]  }
 0x149   :  { %3007 = vmatpush1.bf16.msra.mxu1 %v5000_v47  ;;  %4445 = vmatpush3.bf16.msra.mxu0 %v5014_v32  ;;  %v5053_v47 = vld [vmem:[#allocation5 + $0x2c0] ss:$12 sps:$4 sm:$0xff]   ;;  %v5050_v32 = vld [vmem:[#allocation5 + $0x1f8] ss:$12 sps:$4 sm:$0xff]  }
 0x14a   :  { %3008 = vmatprep.subr.bf16.mxu1 %v5007_v49  ;;  %4446 = vmatprep.subr.bf16.mxu0 %v5018_v50  ;;  %v5054_v49 = vld [vmem:[#allocation5 + $0x200] ss:$12 sps:$4 sm:$0xff]   ;;  %v377_v50 = vrot.slane %v5435_v3, %v376_v45 }
 0x14d   :  { %3009 = vmatpush1.bf16.msra.mxu1 %v5005_v51  ;;  %4447 = vmatpush3.bf16.msra.mxu0 %v5019_v52  ;;  %v5057_v51 = vld [vmem:[#allocation5 + $0x214] ss:$12 sps:$4 sm:$0xff]   ;;  %v5058_v52 = vld [vmem:[#allocation5 + $0x2d8] ss:$12 sps:$4 sm:$0xff]  }
 0x14e   :  { %3010 = vmatprep.subr.bf16.mxu1 %v5012_v53  ;;  %4448 = vmatprep.subr.bf16.mxu0 %v5023_v54  ;;  %v384_v53 = vsub.s32 4, %v5427_v1  ;;  %v5055_v54 = vld [vmem:[#allocation5 + $0x210] ss:$12 sps:$4 sm:$0xff]  }
 0x151   :  { %3011 = vmatpush1.bf16.msra.mxu1 %v5010_v55  ;;  %4449 = vmatpush3.bf16.msra.mxu0 %v5024_v56  ;;  %v5059_v55 = vld [vmem:[#allocation5 + $0x218] ss:$12 sps:$4 sm:$0xff]  }
 0x152   :  { %3012 = vmatprep.subr.bf16.mxu1 %v5017_v57  ;;  %4456 = vmatprep.subr.bf16.mxu0 %v5028_v58  ;;  %v5062_v57 = vld [vmem:[#allocation5 + $0x22c] ss:$12 sps:$4 sm:$0xff]   ;;  %v5063_v58 = vld [vmem:[#allocation5 + $0x2f0] ss:$12 sps:$4 sm:$0xff]  }
 0x155   :  { %3013 = vmatpush1.bf16.msra.mxu1 %v5015_v59 }
 0x156   :  { %3014 = vmatprep.subr.bf16.mxu1 %v5022_v60  ;;  %v385_v60 = vrot.slane %v5435_v3, %v384_v53  ;;  %v5065_v3 = vld [vmem:[#allocation5 + $0x240] ss:$12 sps:$4 sm:$0xff]  }
 0x159   :  { %3015 = vmatpush1.bf16.msra.mxu1 %v5020_v61 }
 0x15a   :  { %3025 = vmatprep.subr.bf16.mxu1 %v5027_v62 }
 0x1c7   :  { %v1826_v12 = vpop.f32.mrb[0].mxu0  ;;  %v5446_v17 = vpop.f32.mrb[0].mxu1 }
 0x1c8   :  { %v4564_v9 = vadd.f32 %v1826_v12, %v369_v5  ;;  %v1828_v10 = vpop.f32.mrb[1].mxu0  ;;  %v1992_v11 = vpop.f32.mrb[1].mxu1  ;;  %v4566_v56 = vadd.f32 %v5446_v17, %v377_v50  ;;  %v5064_v5 = vld [vmem:[#allocation5 + $0x230] ss:$12 sps:$4 sm:$0xff]  }
 0x1c9   :  { %v4565_v13 = vadd.f32 %v1828_v10, %v373_v7  ;;  %v4567_v14 = vadd.f32 %v1992_v11, %v381_v8  ;;  %v1830_v15 = vpop.f32.mrb[2].mxu0  ;;  %v1994_v16 = vpop.f32.mrb[2].mxu1  ;;  %v5067_v17 = vld [vmem:[#allocation5 + $0x244] ss:$12 sps:$4 sm:$0xff]  }
 0x1ca   :  { %v2157_v18 = vmax.f32 %v4564_v9, 0.0  ;;  %v1831_v19 = vpop.f32.mrb[3].mxu0  ;;  %v1995_v21 = vpop.f32.mrb[3].mxu1  ;;  %v2159_v10 = vmax.f32 %v4566_v56, 0.0  ;;  %v5071_v15 = vld [vmem:[#allocation5 + $0x308] ss:$12 sps:$4 sm:$0xff]  }
 0x1cb   :  { %v2158_v22 = vmax.f32 %v4565_v13, 0.0  ;;  %v2160_v23 = vmax.f32 %v4567_v14, 0.0  ;;  %v5070_v19 = vld [vmem:[#allocation5 + $0x25c] ss:$12 sps:$4 sm:$0xff]   ;;  %v5098_v50 = vld [vmem:[#allocation5 + $0x304] ss:$12 sps:$4 sm:$0xff]  }
 0x1cc   :  { %v2162_v28 = vpack.c.bf16 %v2157_v18, %v2157_v18  ;;  %v5457_v18 = vpack.c.bf16 %v2159_v10, %v2159_v10  ;;  %v5118_v10 = vld [vmem:[#allocation5 + $0x3a8] ss:$12 sps:$4 sm:$0xff]  }
 0x1cd   :  { %v2163_v24 = vpack.c.bf16 %v2158_v22, %v2158_v22  ;;  %v2165_v31 = vpack.c.bf16 %v2160_v23, %v2160_v23  ;;  %v5068_v23 = vld [vmem:[#allocation5 + $0x258] ss:$12 sps:$4 sm:$0xff]  }
 0x1cf   :  { %3016 = vmatprep.mubr.bf16.mxu1 %v2163_v24  ;;  %3139 = vmatprep.mubr.bf16.mxu0 %v2163_v24  ;;  %v5075_v24 = vld [vmem:[#allocation5 + $0x320] ss:$12 sps:$4 sm:$0xff]  }
 0x1d0   :  { %3017 = vmatmul.mubr.bf16.vlgmr.msra.gmra.mrb[12].mxu1 %v2162_v28  ;;  %3140 = vmatmul.mubr.bf16.vlgmr.msra.gmra.mrb[12].mxu0 %v2162_v28 }
 0x1d1   :  { %3026 = vmatpush1.bf16.msra.mxu1 %v5025_v26  ;;  %4457 = vmatpush3.bf16.msra.mxu0 %v5029_v27  ;;  %v5074_v27 = vld [vmem:[#allocation5 + $0x274] ss:$12 sps:$4 sm:$0xff]  }
 0x1d2   :  { %3057 = vmatprep.mubr.bf16.mxu1 %v2165_v31  ;;  %3179 = vmatprep.mubr.bf16.mxu0 %v2165_v31  ;;  %v5078_v31 = vld [vmem:[#allocation5 + $0x28c] ss:$12 sps:$4 sm:$0xff]  }
 0x1d3   :  { %3027 = vmatprep.subr.bf16.mxu1 %v5032_v29  ;;  %4458 = vmatprep.subr.bf16.mxu0 %v5033_v30  ;;  %v5072_v29 = vld [vmem:[#allocation5 + $0x270] ss:$12 sps:$4 sm:$0xff]   ;;  %v5079_v30 = vld [vmem:[#allocation5 + $0x338] ss:$12 sps:$4 sm:$0xff]  }
 0x1d5   :  { %3028 = vmatpush1.bf16.msra.mxu1 %v5030_v33  ;;  %4459 = vmatpush3.bf16.msra.mxu0 %v5034_v34  ;;  %v5076_v33 = vld [vmem:[#allocation5 + $0x288] ss:$12 sps:$4 sm:$0xff]   ;;  %v5083_v34 = vld [vmem:[#allocation5 + $0x350] ss:$12 sps:$4 sm:$0xff]  }
 0x1d6   :  { %3029 = vmatprep.subr.bf16.mxu1 %v5037_v35  ;;  %4460 = vmatprep.subr.bf16.mxu0 %v5038_v36  ;;  %v5082_v35 = vld [vmem:[#allocation5 + $0x2a4] ss:$12 sps:$4 sm:$0xff]   ;;  %v5080_v36 = vld [vmem:[#allocation5 + $0x2a0] ss:$12 sps:$4 sm:$0xff]  }
 0x1d9   :  { %3030 = vmatpush1.bf16.msra.mxu1 %v5035_v37  ;;  %4461 = vmatpush3.bf16.msra.mxu0 %v5039_v38  ;;  %v5087_v37 = vld [vmem:[#allocation5 + $0x368] ss:$12 sps:$4 sm:$0xff]  }
 0x1da   :  { %3031 = vmatprep.subr.bf16.mxu1 %v5042_v39  ;;  %4462 = vmatprep.subr.bf16.mxu0 %v5043_v40  ;;  %v5086_v38 = vld [vmem:[#allocation5 + $0x2bc] ss:$12 sps:$4 sm:$0xff]   ;;  %v5084_v39 = vld [vmem:[#allocation5 + $0x2b8] ss:$12 sps:$4 sm:$0xff]   ;;  %v5091_v40 = vld [vmem:[#allocation5 + $0x380] ss:$12 sps:$4 sm:$0xff]  }
 0x1dd   :  { %3032 = vmatpush1.bf16.msra.mxu1 %v5040_v41  ;;  %4463 = vmatpush3.bf16.msra.mxu0 %v5044_v42  ;;  %v5090_v41 = vld [vmem:[#allocation5 + $0x2d4] ss:$12 sps:$4 sm:$0xff]   ;;  %v5088_v42 = vld [vmem:[#allocation5 + $0x2d0] ss:$12 sps:$4 sm:$0xff]  }
 0x1de   :  { %3033 = vmatprep.subr.bf16.mxu1 %v5047_v20  ;;  %4464 = vmatprep.subr.bf16.mxu0 %v5048_v43  ;;  %v5095_v20 = vld [vmem:[#allocation5 + $0x398] ss:$12 sps:$4 sm:$0xff]  }
 0x1df   :  { %v5094_v43 = vld [vmem:[#allocation5 + $0x2ec] ss:$12 sps:$4 sm:$0xff]  }
 0x1e1   :  { %3034 = vmatpush1.bf16.msra.mxu1 %v5045_v44  ;;  %4465 = vmatpush3.bf16.msra.mxu0 %v5049_v48 }
 0x1e2   :  { %3035 = vmatprep.subr.bf16.mxu1 %v5052_v46  ;;  %4466 = vmatprep.subr.bf16.mxu0 %v5053_v47  ;;  %v5092_v47 = vld [vmem:[#allocation5 + $0x2e8] ss:$12 sps:$4 sm:$0xff]  }
 0x1e5   :  { %3036 = vmatpush1.bf16.msra.mxu1 %v5050_v32  ;;  %4467 = vmatpush3.bf16.msra.mxu0 %v5054_v49  ;;  %v5099_v32 = vld [vmem:[#allocation5 + $0x3b0] ss:$12 sps:$4 sm:$0xff]  }
 0x1e6   :  { %3037 = vmatprep.subr.bf16.mxu1 %v5057_v51  ;;  %4468 = vmatprep.subr.bf16.mxu0 %v5058_v52 }
 0x1e7   :  { %v4382_v59 = vpop.f32.mrb[4].mxu0  ;;  %v4404_v61 = vpop.f32.mrb[4].mxu1 }
 0x1e8   :  { %v4383_v62 = vpop.f32.mrb[5].mxu0  ;;  %v4405_v0 = vpop.f32.mrb[5].mxu1 }
 0x1e9   :  { %3038 = vmatpush1.bf16.msra.mxu1 %v5055_v54  ;;  %4469 = vmatpush3.bf16.msra.mxu0 %v5059_v55  ;;  %v4384_v7 = vadd.f32 %v4383_v62, %v4382_v59  ;;  %v4385_v8 = vpop.f32.mrb[6].mxu0  ;;  %v4406_v12 = vadd.f32 %v4405_v0, %v4404_v61  ;;  %v4407_v9 = vpop.f32.mrb[6].mxu1  ;;  %v5096_v54 = vld [vmem:[#allocation5 + $0x300] ss:$12 sps:$4 sm:$0xff]   ;;  %v5102_v55 = vld [vmem:[#allocation5 + $0x31c] ss:$12 sps:$4 sm:$0xff]  }
 0x1ea   :  { %3039 = vmatprep.subr.bf16.mxu1 %v5062_v57  ;;  %4470 = vmatprep.subr.bf16.mxu0 %v5063_v58  ;;  %v4386_v11 = vpop.f32.mrb[7].mxu0  ;;  %v4408_v13 = vpop.f32.mrb[7].mxu1  ;;  %v5100_v58 = vld [vmem:[#allocation5 + $0x318] ss:$12 sps:$4 sm:$0xff]   ;;  %v5105_v59 = vld [vmem:[#allocation5 + $0x334] ss:$12 sps:$4 sm:$0xff]  }
 0x1eb   :  { %v2032_v14 = vadd.f32 %v4384_v7, %v385_v60  ;;  %v5103_v60 = vld [vmem:[#allocation5 + $0x330] ss:$12 sps:$4 sm:$0xff]   ;;  %v5108_v61 = vld [vmem:[#allocation5 + $0x34c] ss:$12 sps:$4 sm:$0xff]   ;;  %v5106_v62 = vld [vmem:[#allocation5 + $0x348] ss:$12 sps:$4 sm:$0xff]  }
 0x1ec   :  { %v5111_v0 = vld [vmem:[#allocation5 + $0x364] ss:$12 sps:$4 sm:$0xff]   ;;  %v5117_v8 = vld [vmem:[#allocation5 + $0x394] ss:$12 sps:$4 sm:$0xff]   ;;  %v5120_v9 = vld [vmem:[#allocation5 + $0x3ac] ss:$12 sps:$4 sm:$0xff]  }
 0x1ed   :  { %3040 = vmatpush1.bf16.msra.mxu1 %v5060_v6  ;;  %4471 = vmatpush3.bf16.msra.mxu0 %v5064_v5  ;;  %v5455_v16 = vadd.f32 %v4406_v12, %v2032_v14  ;;  %v5109_v6 = vld [vmem:[#allocation5 + $0x360] ss:$12 sps:$4 sm:$0xff]   ;;  %v5114_v5 = vld [vmem:[#allocation5 + $0x37c] ss:$12 sps:$4 sm:$0xff]   ;;  %v5112_v7 = vld [vmem:[#allocation5 + $0x378] ss:$12 sps:$4 sm:$0xff]  }
 0x1ee   :  { %3041 = vmatprep.subr.bf16.mxu1 %v5067_v17  ;;  %4524 = vmatprep.subr.bf16.mxu0 %v5296_v63  ;;  %v5115_v12 = vld [vmem:[#allocation5 + $0x390] ss:$12 sps:$4 sm:$0xff]   ;;  %v5121_v17 = vld [vmem:[%s5733_s3] ss:$8 sps:$4 sm:$0xff]   ;;  %v5126_v13 = vld [vmem:[%s5733_s3 + $0x14] ss:$8 sps:$4 sm:$0xff]  }
 0x1ef   :  { %v2151_v21 = vpop.f32.mrb[8].mxu1  ;;  %v5123_v11 = vld [vmem:[%s5733_s3 + $0x4] ss:$8 sps:$4 sm:$0xff]   ;;  %v5124_v14 = vld [vmem:[%s5733_s3 + $0x10] ss:$8 sps:$4 sm:$0xff]  }
 0x1f0   :  { %3180 = vmatmul.mubr.bf16.vlgmr.msra.gmra.mrb[16].mxu0 %v5457_v18  ;;  %v4522_v22 = vpop.f32.mrb[9].mxu1 }
 0x1f1   :  { %3042 = vmatpush1.bf16.msra.mxu1 %v5065_v3  ;;  %4525 = vmatpush3.bf16.msra.mxu0 %v5071_v15  ;;  %v2154_v26 = vpop.f32.mrb[10].mxu1  ;;  %v5129_v3 = vld [vmem:[%s5733_s3 + $0x24] ss:$8 sps:$4 sm:$0xff]   ;;  %v5127_v15 = vld [vmem:[%s5733_s3 + $0x20] ss:$8 sps:$4 sm:$0xff]  }
 0x1f2   :  { %3043 = vmatprep.subr.bf16.mxu1 %v5070_v19  ;;  %4526 = vmatprep.subr.bf16.mxu0 %v5296_v63  ;;  %v4523_v28 = vpop.f32.mrb[11].mxu1  ;;  %v5135_v19 = vld [vmem:[%s5733_s3 + $0x44] ss:$8 sps:$4 sm:$0xff]   ;;  %v5138_v22 = vld [vmem:[%s5733_s3 + $0x54] ss:$8 sps:$4 sm:$0xff]  }
 0x1f3   :  { %4540 = vmatprep.mubr.msk.bf16.mxu0 %vm5297_vm1, %v5296_v63  ;;  %v5139_v26 = vld [vmem:[%s5733_s3 + $0x60] ss:$8 sps:$4 sm:$0xff]   ;;  %v5142_v28 = vld [vmem:[%s5733_s3 + $0x70] ss:$8 sps:$4 sm:$0xff]  }
 0x1f5   :  { %3044 = vmatpush1.bf16.msra.mxu1 %v5068_v23  ;;  %4527 = vmatpush3.bf16.msra.mxu0 %v5075_v24  ;;  %v5136_v23 = vld [vmem:[%s5733_s3 + $0x50] ss:$8 sps:$4 sm:$0xff]   ;;  %v5141_v24 = vld [vmem:[%s5733_s3 + $0x64] ss:$8 sps:$4 sm:$0xff]  }
 0x1f6   :  { %3045 = vmatprep.subr.bf16.mxu1 %v5074_v27  ;;  %4528 = vmatprep.subr.bf16.mxu0 %v5296_v63  ;;  %v5144_v27 = vld [vmem:[%s5733_s3 + $0x74] ss:$8 sps:$4 sm:$0xff]  }
 0x1f9   :  { %3046 = vmatpush1.bf16.msra.mxu1 %v5072_v29  ;;  %4529 = vmatpush3.bf16.msra.mxu0 %v5079_v30  ;;  %v5147_v29 = vld [vmem:[%s5733_s3 + $0x84] ss:$8 sps:$4 sm:$0xff]   ;;  %v5145_v30 = vld [vmem:[%s5733_s3 + $0x80] ss:$8 sps:$4 sm:$0xff]  }
 0x1fa   :  { %3047 = vmatprep.subr.bf16.mxu1 %v5078_v31  ;;  %4530 = vmatprep.subr.bf16.mxu0 %v5296_v63  ;;  %v5150_v31 = vld [vmem:[%s5733_s3 + $0x94] ss:$8 sps:$4 sm:$0xff]  }
 0x1fd   :  { %3048 = vmatpush1.bf16.msra.mxu1 %v5076_v33  ;;  %4531 = vmatpush3.bf16.msra.mxu0 %v5083_v34  ;;  %v5148_v33 = vld [vmem:[%s5733_s3 + $0x90] ss:$8 sps:$4 sm:$0xff]   ;;  %v5153_v34 = vld [vmem:[%s5733_s3 + $0xa4] ss:$8 sps:$4 sm:$0xff]  }
 0x1fe   :  { %3049 = vmatprep.subr.bf16.mxu1 %v5082_v35  ;;  %4532 = vmatprep.subr.bf16.mxu0 %v5296_v63  ;;  %v5151_v35 = vld [vmem:[%s5733_s3 + $0xa0] ss:$8 sps:$4 sm:$0xff]  }
 0x201   :  { %3050 = vmatpush1.bf16.msra.mxu1 %v5080_v36  ;;  %4533 = vmatpush3.bf16.msra.mxu0 %v5087_v37  ;;  %v5156_v36 = vld [vmem:[%s5733_s3 + $0xb4] ss:$8 sps:$4 sm:$0xff]   ;;  %v5154_v37 = vld [vmem:[%s5733_s3 + $0xb0] ss:$8 sps:$4 sm:$0xff]  }
 0x202   :  { %3051 = vmatprep.subr.bf16.mxu1 %v5086_v38  ;;  %4534 = vmatprep.subr.bf16.mxu0 %v5296_v63  ;;  %v5159_v38 = vld [vmem:[%s5733_s3 + $0xc4] ss:$8 sps:$4 sm:$0xff]  }
 0x205   :  { %3052 = vmatpush1.bf16.msra.mxu1 %v5084_v39  ;;  %4535 = vmatpush3.bf16.msra.mxu0 %v5091_v40  ;;  %v5157_v39 = vld [vmem:[%s5733_s3 + $0xc0] ss:$8 sps:$4 sm:$0xff]   ;;  %v5162_v40 = vld [vmem:[%s5733_s3 + $0xd4] ss:$8 sps:$4 sm:$0xff]  }
 0x206   :  { %3053 = vmatprep.subr.bf16.mxu1 %v5090_v41  ;;  %4536 = vmatprep.subr.bf16.mxu0 %v5296_v63  ;;  %v5160_v41 = vld [vmem:[%s5733_s3 + $0xd0] ss:$8 sps:$4 sm:$0xff]  }
 0x207   :  { %v4426_v44 = vpop.f32.mrb[8].mxu0 }
 0x208   :  { %v4427_v48 = vpop.f32.mrb[9].mxu0 }
 0x209   :  { %v4428_v46 = vadd.f32 %v4427_v48, %v4426_v44  ;;  %3054 = vmatpush1.bf16.msra.mxu1 %v5088_v42  ;;  %4537 = vmatpush3.bf16.msra.mxu0 %v5095_v20  ;;  %v4429_v49 = vpop.f32.mrb[10].mxu0  ;;  %v5165_v42 = vld [vmem:[%s5733_s3 + $0xe4] ss:$8 sps:$4 sm:$0xff]   ;;  %v5163_v20 = vld [vmem:[%s5733_s3 + $0xe0] ss:$8 sps:$4 sm:$0xff]  }
 0x20a   :  { %3055 = vmatprep.subr.bf16.mxu1 %v5094_v43  ;;  %4538 = vmatprep.subr.bf16.mxu0 %v5296_v63  ;;  %v4430_v51 = vpop.f32.mrb[11].mxu0  ;;  %v5168_v43 = vld [vmem:[%s5733_s3 + $0xf4] ss:$8 sps:$4 sm:$0xff]   ;;  %v5166_v44 = vld [vmem:[%s5733_s3 + $0xf0] ss:$8 sps:$4 sm:$0xff]  }
 0x20b   :  { %v2112_v52 = vadd.f32 %v4428_v46, %v5455_v16  ;;  %v5132_v16 = vld [vmem:[%s5733_s3 + $0x34] ss:$8 sps:$4 sm:$0xff]   ;;  %v5171_v48 = vld [vmem:[%s5733_s3 + $0x104] ss:$8 sps:$4 sm:$0xff]  }
 0x20c   :  { %v5193_v51 = vld [vmem:[%s5734_s4 + $0x40] sm:$0xff]  }
 0x20d   :  { %v2152_v53 = vadd.f32 %v2151_v21, %v2112_v52  ;;  %3056 = vmatpush1.bf16.msra.mxu1 %v5092_v47  ;;  %4539 = vmatpush3.bf16.msra.mxu0 %v5099_v32  ;;  %v5133_v21 = vld [vmem:[%s5733_s3 + $0x40] ss:$8 sps:$4 sm:$0xff]  }
 0x20e   :  { %3066 = vmatprep.subr.bf16.mxu1 %v5098_v50  ;;  %3533 = vmatprep.subr.bf16.mxu0 %v5123_v11  ;;  %v5194_v52 = vld [vmem:[%s5734_s4] sm:$0xff]  }
 0x20f   :  { %v2161_v56 = vmax.f32 %v2152_v53, 0.0  ;;  %v5195_v53 = vld [vmem:[%s5734_s4 + $0x48] sm:$0xff]  }
 0x210   :  { %3058 = vmatmul.mubr.bf16.vlgmr.msra.gmra.mrb[12].mxu1 %v5457_v18  ;;  %v5130_v18 = vld [vmem:[%s5733_s3 + $0x30] ss:$8 sps:$4 sm:$0xff]  }
 0x211   :  { %v2166_v57 = vpack.c.bf16 %v2161_v56, %v2161_v56  ;;  %3067 = vmatpush1.bf16.msra.mxu1 %v5096_v54  ;;  %3098 = vmatprep.mubr.bf16.mxu1 %v5295_v25  ;;  %v5196_v54 = vld [vmem:[%s5734_s4 + $0x8] sm:$0xff]   ;;  %v5198_v56 = vld [vmem:[%s5734_s4 + $0x10] sm:$0xff]  }
 0x212   :  { %3068 = vmatprep.subr.bf16.mxu1 %v5102_v55  ;;  %v5197_v55 = vld [vmem:[%s5734_s4 + $0x50] sm:$0xff]  }
 0x213   :  { %4541 = vmatmul.mubr.bf16.vlgmr.msra.gmra.mrb[20].mxu0 %v2166_v57 }
 0x214   :  { %3534 = vmatpush1.bf16.msra.mxu0 %v5121_v17 }
 0x215   :  { %3069 = vmatpush1.bf16.msra.mxu1 %v5100_v58  ;;  %3535 = vmatprep.subr.bf16.mxu0 %v5126_v13  ;;  %v5200_v58 = vld [vmem:[%s5734_s4 + $0x18] sm:$0xff]  }
 0x216   :  { %3070 = vmatprep.subr.bf16.mxu1 %v5105_v59  ;;  %v5201_v59 = vld [vmem:[%s5734_s4 + $0x60] sm:$0xff]  }
 0x218   :  { %3536 = vmatpush1.bf16.msra.mxu0 %v5124_v14 }
 0x219   :  { %3071 = vmatpush1.bf16.msra.mxu1 %v5103_v60  ;;  %3537 = vmatprep.subr.bf16.mxu0 %v5129_v3  ;;  %v5202_v60 = vld [vmem:[%s5734_s4 + $0x20] sm:$0xff]  }
 0x21a   :  { %3072 = vmatprep.subr.bf16.mxu1 %v5108_v61  ;;  %v5203_v61 = vld [vmem:[%s5734_s4 + $0x68] sm:$0xff]  }
 0x21c   :  { %3538 = vmatpush1.bf16.msra.mxu0 %v5127_v15 }
 0x21d   :  { %3073 = vmatpush1.bf16.msra.mxu1 %v5106_v62  ;;  %3539 = vmatprep.subr.bf16.mxu0 %v5132_v16  ;;  %v2327_v62 = vld [vmem:[%s5736_s6 + $0x5] sm:$0x7] }
 0x21e   :  { %3074 = vmatprep.subr.bf16.mxu1 %v5111_v0  ;;  %v5204_v0 = vld [vmem:[%s5734_s4 + $0x28] sm:$0xff]   ;;  %v2332_v16 = vrot.slane %v2327_v62, %v5430_v2 }
 0x220   :  { %3540 = vmatpush1.bf16.msra.mxu0 %v5130_v18  ;;  %v2336_v18 = vrot.slane %v2327_v62, %v5438_v4 }
 0x221   :  { %3075 = vmatpush1.bf16.msra.mxu1 %v5109_v6  ;;  %3541 = vmatprep.subr.bf16.mxu0 %v5135_v19  ;;  %v2340_v6 = vrot.slane %v2327_v62, %v376_v45 }
 0x222   :  { %3076 = vmatprep.subr.bf16.mxu1 %v5114_v5 }
 0x224   :  { %3542 = vmatpush1.bf16.msra.mxu0 %v5133_v21 }
 0x225   :  { %3077 = vmatpush1.bf16.msra.mxu1 %v5112_v7  ;;  %3543 = vmatprep.subr.bf16.mxu0 %v5138_v22 }
 0x226   :  { %3078 = vmatprep.subr.bf16.mxu1 %v5117_v8 }
 0x228   :  { %3544 = vmatpush1.bf16.msra.mxu0 %v5136_v23 }
 0x229   :  { %3079 = vmatpush1.bf16.msra.mxu1 %v5115_v12  ;;  %3545 = vmatprep.subr.bf16.mxu0 %v5141_v24 }
 0x22a   :  { %3080 = vmatprep.subr.bf16.mxu1 %v5120_v9 }
 0x22c   :  { %3546 = vmatpush1.bf16.msra.mxu0 %v5139_v26 }
 0x22d   :  { %3081 = vmatpush1.bf16.msra.mxu1 %v5118_v10  ;;  %3547 = vmatprep.subr.bf16.mxu0 %v5144_v27 }
 0x22e   :  { %4487 = vmatprep.subr.bf16.mxu1 %v5193_v51 }
 0x230   :  { %3099 = vmatmul.mubr.bf16.vlgmr.msra.gmra.mrb[12].mxu1 %v2166_v57  ;;  %3548 = vmatpush1.bf16.msra.mxu0 %v5142_v28  ;;  %v5199_v57 = vld [vmem:[%s5734_s4 + $0x58] sm:$0xff]   ;;  %v5169_v28 = vld [vmem:[%s5733_s3 + $0x100] ss:$8 sps:$4 sm:$0xff]  }
 0x231   :  { %3549 = vmatprep.subr.bf16.mxu0 %v5147_v29  ;;  %4488 = vmatpush3.bf16.msra.mxu1 %v5194_v52 }
 0x232   :  { %4489 = vmatprep.subr.bf16.mxu1 %v5195_v53 }
 0x234   :  { %3550 = vmatpush1.bf16.msra.mxu0 %v5145_v30  ;;  %v5174_v30 = vld [vmem:[%s5733_s3 + $0x114] ss:$8 sps:$4 sm:$0xff]  }
 0x235   :  { %3551 = vmatprep.subr.bf16.mxu0 %v5150_v31  ;;  %4490 = vmatpush3.bf16.msra.mxu1 %v5196_v54  ;;  %v5172_v31 = vld [vmem:[%s5733_s3 + $0x110] ss:$8 sps:$4 sm:$0xff]  }
 0x236   :  { %4491 = vmatprep.subr.bf16.mxu1 %v5197_v55 }
 0x238   :  { %3552 = vmatpush1.bf16.msra.mxu0 %v5148_v33  ;;  %v5177_v33 = vld [vmem:[%s5733_s3 + $0x124] ss:$8 sps:$4 sm:$0xff]  }
 0x239   :  { %3553 = vmatprep.subr.bf16.mxu0 %v5153_v34  ;;  %4492 = vmatpush3.bf16.msra.mxu1 %v5198_v56  ;;  %v5175_v34 = vld [vmem:[%s5733_s3 + $0x120] ss:$8 sps:$4 sm:$0xff]  }
 0x23a   :  { %4493 = vmatprep.subr.bf16.mxu1 %v5199_v57 }
 0x23c   :  { %3554 = vmatpush1.bf16.msra.mxu0 %v5151_v35  ;;  %v5180_v35 = vld [vmem:[%s5733_s3 + $0x134] ss:$8 sps:$4 sm:$0xff]  }
 0x23d   :  { %3555 = vmatprep.subr.bf16.mxu0 %v5156_v36  ;;  %4494 = vmatpush3.bf16.msra.mxu1 %v5200_v58  ;;  %v5183_v36 = vld [vmem:[%s5733_s3 + $0x144] ss:$8 sps:$4 sm:$0xff]  }
 0x23e   :  { %4495 = vmatprep.subr.bf16.mxu1 %v5201_v59 }
 0x240   :  { %3556 = vmatpush1.bf16.msra.mxu0 %v5154_v37  ;;  %v5181_v37 = vld [vmem:[%s5733_s3 + $0x140] ss:$8 sps:$4 sm:$0xff]  }
 0x241   :  { %3557 = vmatprep.subr.bf16.mxu0 %v5159_v38  ;;  %4496 = vmatpush3.bf16.msra.mxu1 %v5202_v60  ;;  %v5186_v38 = vld [vmem:[%s5733_s3 + $0x154] ss:$8 sps:$4 sm:$0xff]  }
 0x242   :  { %4497 = vmatprep.subr.bf16.mxu1 %v5203_v61  ;;  %v5209_v61 = vld [vmem:[%s5735_s5] sm:$0xff]  }
 0x244   :  { %3558 = vmatpush1.bf16.msra.mxu0 %v5157_v39  ;;  %v5184_v39 = vld [vmem:[%s5733_s3 + $0x150] ss:$8 sps:$4 sm:$0xff]  }
 0x245   :  { %3559 = vmatprep.subr.bf16.mxu0 %v5162_v40  ;;  %4498 = vmatpush3.bf16.msra.mxu1 %v5204_v0  ;;  %v5189_v40 = vld [vmem:[%s5733_s3 + $0x164] ss:$8 sps:$4 sm:$0xff]   ;;  %v5212_v0 = vld [vmem:[%s5735_s5 + $0x18] sm:$0xff]  }
 0x248   :  { %3560 = vmatpush1.bf16.msra.mxu0 %v5160_v41  ;;  %v5187_v41 = vld [vmem:[%s5733_s3 + $0x160] ss:$8 sps:$4 sm:$0xff]  }
 0x249   :  { %3561 = vmatprep.subr.bf16.mxu0 %v5165_v42  ;;  %v5192_v42 = vld [vmem:[%s5733_s3 + $0x174] ss:$8 sps:$4 sm:$0xff]  }
 0x24c   :  { %3562 = vmatpush1.bf16.msra.mxu0 %v5163_v20  ;;  %v5190_v20 = vld [vmem:[%s5733_s3 + $0x170] ss:$8 sps:$4 sm:$0xff]  }
 0x24d   :  { %3563 = vmatprep.subr.bf16.mxu0 %v5168_v43 }
 0x250   :  { %3564 = vmatpush1.bf16.msra.mxu0 %v5166_v44 }
 0x251   :  { %3574 = vmatprep.subr.bf16.mxu0 %v5171_v48  ;;  %v5205_v48 = vld [vmem:[%s5734_s4 + $0x70] sm:$0xff]  }
 0x252   :  { %4499 = vmatprep.subr.bf16.mxu1 %v5205_v48 }
 0x2a3   :  { %v4450_v46 = vpop.f32.mrb[12].mxu0 }
 0x2a4   :  { %v4451_v47 = vpop.f32.mrb[13].mxu0 }
 0x2a5   :  { %v4452_v32 = vadd.f32 %v4451_v47, %v4450_v46  ;;  %v4453_v49 = vpop.f32.mrb[14].mxu0  ;;  %v5206_v46 = vld [vmem:[%s5734_s4 + $0x30] sm:$0xff]   ;;  %v5207_v47 = vld [vmem:[%s5734_s4 + $0x78] sm:$0xff]  }
 0x2a6   :  { %v4454_v50 = vpop.f32.mrb[15].mxu0  ;;  %4500 = vmatpush3.bf16.msra.mxu1 %v5206_v46  ;;  %v3281_v49 = vld [vmem:[%s5736_s6 + $0x8] sm:$0x3] }
 0x2a7   :  { %v3142_v8 = vadd.f32 %v4452_v32, %v2340_v6  ;;  %v5208_v32 = vld [vmem:[%s5734_s4 + $0x38] sm:$0xff]   ;;  %4501 = vmatprep.subr.bf16.mxu1 %v5207_v47  ;;  %v3286_v50 = vrot.slane %v3281_v49, %v5430_v2  ;;  %v3290_v51 = vrot.slane %v3281_v49, %v5438_v4  ;;  %v5210_v2 = vld [vmem:[%s5735_s5 + $0x8] sm:$0xff]   ;;  %v5211_v4 = vld [vmem:[%s5735_s5 + $0x10] sm:$0xff]  }
 0x2a8   :  { %v5213_v6 = vld [vmem:[%s5735_s5 + $0x20] sm:$0xff]  }
 0x2aa   :  { %4502 = vmatpush3.bf16.msra.mxu1 %v5208_v32 }
 0x2ab   :  { %4544 = vmatprep.subr.bf16.mxu1 %v5296_v63 }
 0x2c3   :  { %v4472_v5 = vpop.f32.mrb[16].mxu0 }
 0x2c4   :  { %v4473_v7 = vpop.f32.mrb[17].mxu0 }
 0x2c5   :  { %v4474_v12 = vadd.f32 %v4473_v7, %v4472_v5  ;;  %v4475_v9 = vpop.f32.mrb[18].mxu0  ;;  %v5214_v5 = vld [vmem:[%s5735_s5 + $0x28] sm:$0xff]   ;;  %v5215_v7 = vld [vmem:[%s5735_s5 + $0x30] sm:$0xff]  }
 0x2c6   :  { %v4476_v10 = vpop.f32.mrb[19].mxu0  ;;  %v4340_v9 = vld [vmem:[%s5736_s6 + $0xa] ss:$0 sm:$0xff] }
 0x2c7   :  { %v3182_v17 = vadd.f32 %v4474_v12, %v3142_v8  ;;  %v5216_v8 = vld [vmem:[%s5735_s5 + $0x38] sm:$0xff]   ;;  %s3914_s5 = sshll.u32 %s5298_s14, 4  ;;  %s3915_s5 = int_to_ptr.vmem [resolvable:$true] %s3914_s5 }
 0x2c8   :  { %s5261_s15 = scalar_lea.vmem %s3915_s5, 128  ;;  %p5266_p3 = scmp.lt.s32.totalorder %s3915_s5, %s3915_s5 }
 0x2c9   :  { %p5262_p2 = scmp.ne.s32.totalorder %s3915_s5, %s5261_s15  ;;  %p5267_p4 = scmp.lt.s32.totalorder %s5261_s15, %s5261_s15 }
 0x2cb   :  { %p5268_p5 = por %p5267_p4, %p5266_p3 }
 0x2cd   :  { %p5269_p6 = pnand %p5268_p5, %p5262_p2 }
 0x2e6   :  { %v3221_v11 = vpop.f32.mrb[20].mxu0 }
 0x2e7   :  { %v3222_v13 = vadd.f32 %v3221_v11, %v3182_v17  ;;  %v4542_v14 = vpop.f32.mrb[21].mxu0 }
 0x2e8   :  { %v3224_v3 = vpop.f32.mrb[22].mxu0 }
 0x2e9   :  { %v4543_v15 = vpop.f32.mrb[23].mxu0  ;;  %v3229_v43 = vmax.f32 %v3222_v13, 0.0 }
 0x2eb   :  { %v3232_v44 = vpack.c.bf16 %v3229_v43, %v3229_v43 }
 0x303   :  { %v3100_v19 = vpop.f32.mrb[12].mxu1 }
 0x304   :  { %v4568_v1 = vadd.f32 %v3100_v19, %v2332_v16  ;;  %v3102_v45 = vpop.f32.mrb[13].mxu1 }
 0x305   :  { %v4569_v21 = vadd.f32 %v3102_v45, %v2336_v18  ;;  %v3104_v22 = vpop.f32.mrb[14].mxu1 }
 0x306   :  { %v3227_v23 = vmax.f32 %v4568_v1, 0.0  ;;  %v3105_v24 = vpop.f32.mrb[15].mxu1 }
 0x307   :  { %v3228_v26 = vmax.f32 %v4569_v21, 0.0 }
 0x308   :  { %v3230_v29 = vpack.c.bf16 %v3227_v23, %v3227_v23 }
 0x309   :  { %v3231_v27 = vpack.c.bf16 %v3228_v26, %v3228_v26 }
 0x30b   :  { %3565 = vmatprep.mubr.bf16.mxu0 %v3231_v27 }
 0x30c   :  { %3566 = vmatmul.mubr.bf16.vlgmr.msra.gmra.mrb[24].mxu0 %v3230_v29 }
 0x30d   :  { %3575 = vmatpush1.bf16.msra.mxu0 %v5169_v28  ;;  %3606 = vmatprep.mubr.bf16.mxu0 %v5295_v25  ;;  %v5178_v25 = vld [vmem:[%s5733_s3 + $0x130] ss:$8 sps:$4 sm:$0xff]  }
 0x30e   :  { %3576 = vmatprep.subr.bf16.mxu0 %v5174_v30 }
 0x311   :  { %3577 = vmatpush1.bf16.msra.mxu0 %v5172_v31 }
 0x312   :  { %3578 = vmatprep.subr.bf16.mxu0 %v5177_v33 }
 0x315   :  { %3579 = vmatpush1.bf16.msra.mxu0 %v5175_v34 }
 0x316   :  { %3580 = vmatprep.subr.bf16.mxu0 %v5180_v35 }
 0x319   :  { %3581 = vmatpush1.bf16.msra.mxu0 %v5178_v25 }
 0x31a   :  { %3582 = vmatprep.subr.bf16.mxu0 %v5183_v36 }
 0x31d   :  { %3583 = vmatpush1.bf16.msra.mxu0 %v5181_v37 }
 0x31e   :  { %3584 = vmatprep.subr.bf16.mxu0 %v5186_v38 }
 0x321   :  { %3585 = vmatpush1.bf16.msra.mxu0 %v5184_v39 }
 0x322   :  { %3586 = vmatprep.subr.bf16.mxu0 %v5189_v40 }
 0x325   :  { %3587 = vmatpush1.bf16.msra.mxu0 %v5187_v41 }
 0x326   :  { %3588 = vmatprep.subr.bf16.mxu0 %v5192_v42 }
 0x329   :  { %3589 = vmatpush1.bf16.msra.mxu0 %v5190_v20 }
 0x32c   :  { %3607 = vmatmul.mubr.bf16.vlgmr.msra.gmra.mrb[24].mxu0 %v3232_v44 }
 0x3ff   :  { %v3608_v52 = vpop.f32.mrb[24].mxu0 }
 0x400   :  { %v4570_v53 = vadd.f32 %v3608_v52, %v3286_v50  ;;  %v3610_v54 = vpop.f32.mrb[25].mxu0 }
 0x401   :  { %v4571_v55 = vadd.f32 %v3610_v54, %v3290_v51  ;;  %v3612_v56 = vpop.f32.mrb[26].mxu0 }
 0x402   :  { %v3615_v57 = vmax.f32 %v4570_v53, 0.0  ;;  %v3613_v58 = vpop.f32.mrb[27].mxu0 }
 0x403   :  { %v3616_v59 = vmax.f32 %v4571_v55, 0.0 }
 0x404   :  { %v3617_v62 = vpack.c.bf16 %v3615_v57, %v3615_v57 }
 0x405   :  { %v3618_v60 = vpack.c.bf16 %v3616_v59, %v3616_v59 }
 0x407   :  { %3786 = vmatprep.mubr.bf16.mxu1 %v3618_v60 }
 0x408   :  { %3787 = vmatmul.mubr.bf16.vlgmr.msra.gmra.mrb[16].mxu1 %v3617_v62 }
 0x409   :  { %4545 = vmatpush3.bf16.msra.mxu1 %v5209_v61  ;;  %4560 = vmatprep.mubr.msk.bf16.mxu1 %vm5297_vm1, %v5296_v63 }
 0x40a   :  { %4546 = vmatprep.subr.bf16.mxu1 %v5296_v63 }
 0x40d   :  { %4547 = vmatpush3.bf16.msra.mxu1 %v5210_v2 }
 0x40e   :  { %4548 = vmatprep.subr.bf16.mxu1 %v5296_v63 }
 0x411   :  { %4549 = vmatpush3.bf16.msra.mxu1 %v5211_v4 }
 0x412   :  { %4550 = vmatprep.subr.bf16.mxu1 %v5296_v63 }
 0x415   :  { %4551 = vmatpush3.bf16.msra.mxu1 %v5212_v0 }
 0x416   :  { %4552 = vmatprep.subr.bf16.mxu1 %v5296_v63 }
 0x419   :  { %4553 = vmatpush3.bf16.msra.mxu1 %v5213_v6 }
 0x41a   :  { %4554 = vmatprep.subr.bf16.mxu1 %v5296_v63 }
 0x41d   :  { %4555 = vmatpush3.bf16.msra.mxu1 %v5214_v5 }
 0x41e   :  { %4556 = vmatprep.subr.bf16.mxu1 %v5296_v63 }
 0x421   :  { %4557 = vmatpush3.bf16.msra.mxu1 %v5215_v7 }
 0x422   :  { %4558 = vmatprep.subr.bf16.mxu1 %v5296_v63  ;;  %v4357_v63 = vld [vmem:[%s5736_s6 + $0xb] ss:$0 sm:$0xff] }
 0x425   :  { %4559 = vmatpush3.bf16.msra.mxu1 %v5216_v8 }
 0x4db   :  { %v4503_v12 = vpop.f32.mrb[16].mxu1 }
 0x4dc   :  { %v4504_v10 = vpop.f32.mrb[17].mxu1 }
 0x4dd   :  { %v4505_v17 = vadd.f32 %v4504_v10, %v4503_v12  ;;  %v4506_v11 = vpop.f32.mrb[18].mxu1 }
 0x4de   :  { %v4507_v13 = vpop.f32.mrb[19].mxu1 }
 0x4df   :  { %v3789_v14 = vadd.f32 %v4505_v17, %v4340_v9 }
 0x4e1   :  { %v3794_v3 = vmax.f32 %v3789_v14, 0.0 }
 0x4e3   :  { %v3795_v15 = vpack.c.bf16 %v3794_v3, %v3794_v3 }
 0x4e5   :  { %4561 = vmatmul.mubr.bf16.vlgmr.msra.gmra.mrb[20].mxu1 %v3795_v15 }
 0x5b8   :  { %v3901_v16 = vpop.f32.mrb[20].mxu1 }
 0x5b9   :  { %v3902_v18 = vadd.f32 %v4357_v63, %v3901_v16  ;;  %v4562_v19 = vpop.f32.mrb[21].mxu1 }
 0x5ba   :  { %v3904_v1 = vpop.f32.mrb[22].mxu1 }
 0x5bb   :  { %3907 = vst [vmem:[#allocation7] sm:$0xff] %v3902_v18  ;;  %v4563_v45 = vpop.f32.mrb[23].mxu1 }
 0x5bc   :  { %5272 = shalt.err (!%p5269_p6)
}
 0x5bd   :  { %s5273_s6 = scalar_lea.hbm %s5737_s7, 128 }
 0x5be   :  { %p5274_p7 = scmp.ne.s32.totalorder %s5737_s7, %s5273_s6  ;;  %p5277_p8 = scmp.lt.u32.totalorder %s5273_s6, %s5737_s7 }
 0x5c0   :  { %p5279_p9 = pnand %p5277_p8, %p5274_p7 }
 0x5c2   :  { %5282 = shalt.err (!%p5279_p9)
}
 0x5c3   :  { %3917 = dma.vmem_to_hbm [thread:$0]  %s3915_s5, 128, %s5737_s7, [#allocation4]  }
 0x5c4   :  { %5287 = dma.done.wait [#allocation4], 128  }
 0x5c5   :  { %5288 = vsyncadd [#allocation4], 4294967168 }
 0x5c6   :  { %3921 = vsyncpa [#allocation3], 1 }
 0x5c7   :  { %3922 = vsyncpa [#allocation6], 1 }
 0x5c8   :  { %3923 = vsyncpa [#allocation4], 1 }

</bundles_post_ra>
